<compile_context>
chip_gen: v7x
topology: tpu7x:2x2x1
jax: 0.10.0
libtpu: 0.0.40
codegen_flags: <defaults>
</compile_context>

<pallas_src>
import math
from functools import partial

import numpy as np
import jax
import jax.numpy as jnp
from jax.experimental import pallas as pl
from jax.experimental.pallas import tpu as pltpu


# ------------------------- in-kernel building blocks -------------------------
def _attn_2d(q, k, v, w_out_t, b_out, *, num_heads):
    """nn.MultiheadAttention core for one batch element (q/k/v already projected).

    q: (Lq, E), k/v: (Lk, E), w_out_t: (E, E) pre-transposed, b_out: (1, E).
    K is transposed once; heads accumulate straight into the out-projection.
    """
    _, E = q.shape
    hd = E // num_heads
    scale = 1.0 / math.sqrt(hd)
    kt = k.T                                           # (E, Lk): one transpose per MHA
    out = None
    for h in range(num_heads):
        sl = slice(h * hd, (h + 1) * hd)
        s = jnp.dot(q[:, sl], kt[sl, :], preferred_element_type=jnp.float32) * scale
        s = s - jnp.max(s, axis=-1, keepdims=True)
        p = jnp.exp(s)
        p = p * pl.reciprocal(jnp.sum(p, axis=-1, keepdims=True), approx=True)
        o_h = jnp.dot(p, v[:, sl], preferred_element_type=jnp.float32)        # (Lq, hd)
        c = jnp.dot(o_h, w_out_t[sl, :], preferred_element_type=jnp.float32)  # (Lq, E)
        out = c if out is None else out + c
    return out + b_out


# ------------------------------ fused kernel ---------------------------------
def _actor_kernel(wm_ref, wj_ref, oj_ref, w_ref, out_ref, *,
                  num_heads, offs, B, Lm, Lwj, Lon, E, Dm, A):
    def w(name, rows, cols):
        o = offs[name]
        return w_ref[o:o + rows, :cols]                # static, sublane-aligned slice

    # -------- batched (all B elements at once) projections: fill MXU rows ----
    oj = oj_ref[...]                                                       # (B*Lon, E)
    oj_kv = jnp.dot(oj, w("oj_wkv", E, 2 * E),
                    preferred_element_type=jnp.float32) + w("oj_bkv", 1, 2 * E)
    wm = wm_ref[...]                                                       # (B*Lm, Dm)
    wm_emb = jnp.maximum(
        jnp.dot(wm, w("mfc_w", Dm, E), preferred_element_type=jnp.float32)
        + w("mfc_b", 1, E), 0.0)                                           # (B*Lm, E)
    pm = jnp.dot(wm_emb, w("ma_win", E, 3 * E),
                 preferred_element_type=jnp.float32) + w("ma_bin", 1, 3 * E)
    wj = wj_ref[...]                                                       # (B*Lwj, E)

    # Hoist resident-weight slices out of the per-element loop.
    oj_wq, oj_bq = w("oj_wq", E, E), w("oj_bq", 1, E)
    oj_wout, oj_bout = w("oj_wout", E, E), w("oj_bout", 1, E)
    ja_win, ja_bin = w("ja_win", E, 3 * E), w("ja_bin", 1, 3 * E)
    ja_wout, ja_bout = w("ja_wout", E, E), w("ja_bout", 1, E)
    ma_wout, ma_bout = w("ma_wout", E, E), w("ma_bout", 1, E)
    jm_wq, jm_bq = w("jm_wq", E, E), w("jm_bq", 1, E)
    jm_wkv, jm_bkv = w("jm_wkv", E, 2 * E), w("jm_bkv", 1, 2 * E)
    jm_wout, jm_bout = w("jm_wout", E, E), w("jm_bout", 1, E)

    res_rows = []
    for b in range(B):
        # --- on_job self-attention: only the last (consumed) query row ---
        q_last = jnp.dot(oj[(b + 1) * Lon - 1:(b + 1) * Lon, :], oj_wq,
                         preferred_element_type=jnp.float32) + oj_bq       # (1, E)
        kv_b = oj_kv[b * Lon:(b + 1) * Lon, :]
        on_last = _attn_2d(q_last, kv_b[:, :E], kv_b[:, E:],
                           oj_wout, oj_bout, num_heads=num_heads)
        on_last = jnp.maximum(on_last, 0.0)                                # (1, E)

        # --- wait_job ++ on_last, self-attention ---
        wj_cat = jnp.concatenate([wj[b * Lwj:(b + 1) * Lwj, :], on_last], axis=0)
        pj = jnp.dot(wj_cat, ja_win,
                     preferred_element_type=jnp.float32) + ja_bin          # (Lwj+1, 3E)
        wj_emb = _attn_2d(pj[:, :E], pj[:, E:2 * E], pj[:, 2 * E:],
                          ja_wout, ja_bout, num_heads=num_heads)

        # --- machine self-attention (projection already batched above) ---
        pm_b = pm[b * Lm:(b + 1) * Lm, :]                                  # (Lm, 3E)
        wm_att = _attn_2d(pm_b[:, :E], pm_b[:, E:2 * E], pm_b[:, 2 * E:],
                          ma_wout, ma_bout, num_heads=num_heads)

        # --- cross attention: machines query jobs (pre-split Wq / Wkv) ---
        q_m = jnp.dot(wm_att, jm_wq, preferred_element_type=jnp.float32) + jm_bq
        kv_j = jnp.dot(wj_emb, jm_wkv, preferred_element_type=jnp.float32) + jm_bkv
        res_rows.append(_attn_2d(q_m, kv_j[:, :E], kv_j[:, E:],
                                 jm_wout, jm_bout, num_heads=num_heads))

    # --- final projection to action_dim, batched over every machine row ---
    res = res_rows[0] if B == 1 else jnp.concatenate(res_rows, axis=0)     # (B*Lm, E)
    out_ref[...] = jnp.dot(res, w("qfc_w", E, A),
                           preferred_element_type=jnp.float32) + w("qfc_b", 1, A)


# --------------------- host-side weight packing (done once) -------------------
def _align8(n):
    return -(-n // 8) * 8


def pack_actor_params(params, *, num_heads):
    """Pack all weights/biases into ONE flat f32 (rows, 3E) array + offsets."""
    E = params["q_fc"]["weight"].shape[1]
    Dm = params["machine_fc"]["weight"].shape[1]
    A = params["q_fc"]["weight"].shape[0]
    cols = 3 * E
    entries = []

    def mha_split(prefix, p):       # Wq / Wkv pre-split (cross-attn, last-row query)
        w_in = np.asarray(p["in_proj_weight"], np.float32)       # (3E, E)
        b_in = np.asarray(p["in_proj_bias"], np.float32)         # (3E,)
        entries.append((prefix + "_wq", w_in[:E].T))
        entries.append((prefix + "_bq", b_in[:E][None, :]))
        entries.append((prefix + "_wkv", w_in[E:].T))
        entries.append((prefix + "_bkv", b_in[E:][None, :]))
        entries.append((prefix + "_wout", np.asarray(p["out_proj_weight"], np.float32).T))
        entries.append((prefix + "_bout", np.asarray(p["out_proj_bias"], np.float32)[None, :]))

    def mha_packed(prefix, p):      # full packed QKV in-projection (self-attn)
        entries.append((prefix + "_win", np.asarray(p["in_proj_weight"], np.float32).T))
        entries.append((prefix + "_bin", np.asarray(p["in_proj_bias"], np.float32)[None, :]))
        entries.append((prefix + "_wout", np.asarray(p["out_proj_weight"], np.float32).T))
        entries.append((prefix + "_bout", np.asarray(p["out_proj_bias"], np.float32)[None, :]))

    def linear(prefix, p):
        entries.append((prefix + "_w", np.asarray(p["weight"], np.float32).T))
        entries.append((prefix + "_b", np.asarray(p["bias"], np.float32)[None, :]))

    mha_split("oj", params["on_job_attn"])
    mha_packed("ja", params["job_attn"])
    linear("mfc", params["machine_fc"])
    mha_packed("ma", params["machine_attn"])
    mha_split("jm", params["j_m_attn"])
    linear("qfc", params["q_fc"])

    offsets, blocks, cur = {}, [], 0
    for name, arr in entries:
        r, c = arr.shape
        offsets[name] = cur
        ra = _align8(r)                            # keep every slice sublane-aligned
        blk = np.zeros((ra, cols), np.float32)
        blk[:r, :c] = arr
        blocks.append(blk)
        cur += ra
    packed = jnp.asarray(np.concatenate(blocks, axis=0))
    meta = dict(E=E, Dm=Dm, A=A, num_heads=num_heads, offsets=offsets)
    return packed, meta


# ------------------------------ host wrapper ----------------------------------
def _num_parallel_cores():
    """TensorCores a 'parallel' grid axis can shard over on this device."""
    try:
        kind = jax.devices()[0].device_kind.lower()
    except Exception:
        return 1
    # Single-TensorCore devices: v5e ("v5 lite") and v6e.
    if "lite" in kind or "v5e" in kind or "v6" in kind:
        return 1
    return 2


def actor_forward(packed_w, wait_machine, wait_job, on_job,
                  wait_job_mask=None, on_job_mask=None, machine_mask=None,
                  *, meta):
    # TODO(synk): key_padding_mask support not implemented (module defaults to None).
    if wait_job_mask is not None or on_job_mask is not None:
        raise NotImplementedError("key_padding_mask is not supported")

    E, Dm, A = meta["E"], meta["Dm"], meta["A"]
    num_heads, offs = meta["num_heads"], meta["offsets"]

    N, Lm, _ = wait_machine.shape
    _, Lwj, _ = wait_job.shape
    _, Lon, _ = on_job.shape

    # Batch blocking: one grid step per shardable TensorCore (grid >= 2 only on
    # multi-TC chips; a single full-batch step on v5e/v6e).
    cores = max(1, min(N, _num_parallel_cores()))
    B = -(-N // cores)
    if cores > 1 and ((B * Lm) % 8 or (B * Lwj) % 8 or (B * Lon) % 8):
        B = N                      # fall back to one full block to keep tiling legal
    G = -(-N // B)
    Np = G * B
    if Np != N:                    # zero-pad the batch; padded rows sliced off below
        pad = Np - N
        def pad3(x, L, D):
            return jnp.concatenate([x, jnp.zeros((pad, L, D), x.dtype)], axis=0)
        wait_machine = pad3(wait_machine, Lm, Dm)
        wait_job = pad3(wait_job, Lwj, E)
        on_job = pad3(on_job, Lon, E)

    rows = packed_w.shape[0]
    kern = partial(_actor_kernel, num_heads=num_heads, offs=offs,
                   B=B, Lm=Lm, Lwj=Lwj, Lon=Lon, E=E, Dm=Dm, A=A)
    out2 = pl.pallas_call(
        kern,
        out_shape=jax.ShapeDtypeStruct((Np * Lm, A), jnp.float32),
        grid=(G,),
        in_specs=[
            pl.BlockSpec((B * Lm, Dm), lambda g: (g, 0)),
            pl.BlockSpec((B * Lwj, E), lambda g: (g, 0)),
            pl.BlockSpec((B * Lon, E), lambda g: (g, 0)),
            pl.BlockSpec((rows, 3 * E), lambda g: (0, 0)),   # resident packed weights
        ],
        out_specs=pl.BlockSpec((B * Lm, A), lambda g: (g, 0)),
        compiler_params=pltpu.CompilerParams(
            dimension_semantics=("parallel",)),
    )(wait_machine.reshape(Np * Lm, Dm),
      wait_job.reshape(Np * Lwj, E),
      on_job.reshape(Np * Lon, E),
      packed_w)
    return out2.reshape(Np, Lm, A)[:N]


# ------------------------- pure-JAX reference (check) -------------------------
def _ref_mha(q, kv, p, num_heads):
    E = q.shape[-1]
    hd = E // num_heads
    wq, wk, wv = jnp.split(p["in_proj_weight"], 3, axis=0)
    bq, bk, bv = jnp.split(p["in_proj_bias"], 3, axis=0)
    qp, kp, vp = q @ wq.T + bq, kv @ wk.T + bk, kv @ wv.T + bv

    def split(x):
        n, l, _ = x.shape
        return x.reshape(n, l, num_heads, hd).transpose(0, 2, 1, 3)

    qh, kh, vh = split(qp), split(kp), split(vp)
    s = jnp.einsum("nhqd,nhkd->nhqk", qh, kh) / math.sqrt(hd)
    a = jax.nn.softmax(s, axis=-1)
    o = jnp.einsum("nhqk,nhkd->nhqd", a, vh)
    n, h, l, _ = o.shape
    o = o.transpose(0, 2, 1, 3).reshape(n, l, E)
    return o @ p["out_proj_weight"].T + p["out_proj_bias"]


def actor_forward_ref(params, wait_machine, wait_job, on_job, *, num_heads):
    on = _ref_mha(on_job, on_job, params["on_job_attn"], num_heads)
    on_last = jnp.maximum(on[:, -1:, :], 0.0)
    wj = jnp.concatenate([wait_job, on_last], axis=1)
    wj = _ref_mha(wj, wj, params["job_attn"], num_heads)
    wm = jnp.maximum(wait_machine @ params["machine_fc"]["weight"].T
                     + params["machine_fc"]["bias"], 0.0)
    wm = _ref_mha(wm, wm, params["machine_attn"], num_heads)
    res = _ref_mha(wm, wj, params["j_m_attn"], num_heads)
    return res @ params["q_fc"]["weight"].T + params["q_fc"]["bias"]


# ------------------------------ parameter init --------------------------------
def init_mha_params(key, embed_dim):
    k1, k2, k3, k4 = jax.random.split(key, 4)
    s = 1.0 / math.sqrt(embed_dim)
    return {
        "in_proj_weight": jax.random.uniform(k1, (3 * embed_dim, embed_dim),
                                             jnp.float32, -s, s),
        "in_proj_bias": jax.random.uniform(k2, (3 * embed_dim,), jnp.float32, -s, s),
        "out_proj_weight": jax.random.uniform(k3, (embed_dim, embed_dim),
                                              jnp.float32, -s, s),
        "out_proj_bias": jax.random.uniform(k4, (embed_dim,), jnp.float32, -s, s),
    }


def init_linear_params(key, in_dim, out_dim):
    k1, k2 = jax.random.split(key)
    s = 1.0 / math.sqrt(in_dim)
    return {
        "weight": jax.random.uniform(k1, (out_dim, in_dim), jnp.float32, -s, s),
        "bias": jax.random.uniform(k2, (out_dim,), jnp.float32, -s, s),
    }


if __name__ == "__main__":
    # NB: the original module requires job_input_dim == job_hidden_dim ==
    # machine_hidden_dim for its cross-attention / q_fc to typecheck.
    job_input_dim = 32
    job_hidden_dim = 32
    machine_input_dim = 16
    machine_hidden_dim = 32
    action_dim = 8
    num_heads = 4

    batch = 2
    n_on_jobs = 8
    n_wait_jobs = 8
    n_machines = 8

    key = jax.random.PRNGKey(0)
    keys = jax.random.split(key, 16)
    params = {
        "on_job_attn": init_mha_params(keys[0], job_input_dim),
        "job_attn": init_mha_params(keys[1], job_input_dim),
        "machine_fc": init_linear_params(keys[2], machine_input_dim, machine_hidden_dim),
        "machine_attn": init_mha_params(keys[3], machine_hidden_dim),
        "j_m_attn": init_mha_params(keys[4], job_hidden_dim),
        "q_fc": init_linear_params(keys[5], machine_hidden_dim, action_dim),
    }

    wait_machine = jax.random.normal(keys[10], (batch, n_machines, machine_input_dim),
                                     jnp.float32)
    wait_job = jax.random.normal(keys[11], (batch, n_wait_jobs, job_input_dim),
                                 jnp.float32)
    on_job = jax.random.normal(keys[12], (batch, n_on_jobs, job_input_dim),
                               jnp.float32)

    # Weights are transposed / packed ONCE, outside the jitted per-call path.
    packed_w, meta = pack_actor_params(params, num_heads=num_heads)

    fwd = jax.jit(partial(actor_forward, meta=meta))
    out = jax.block_until_ready(fwd(packed_w, wait_machine, wait_job, on_job))

    assert out.shape == (batch, n_machines, action_dim), out.shape
    ref = actor_forward_ref(params, wait_machine, wait_job, on_job, num_heads=num_heads)
    # Slightly relaxed tolerance: softmax denominators use the approximate EUP
    # reciprocal (pl.reciprocal(approx=True)); everything else is exact f32.
    if not jnp.allclose(out, ref, rtol=2e-3, atol=2e-3):
        raise SystemExit("Pallas output mismatch vs pure-JAX reference: "
                         f"max abs err = {float(jnp.max(jnp.abs(out - ref)))}")

    print("KERNEL_OK")
</pallas_src>

<mosaic_0001>
module attributes {stable_mosaic.version = 11 : i64} {
  func.func @_actor_kernel(%arg0: i32, %arg1: memref<8x16xf32, #tpu.memory_space<vmem>>, %arg2: memref<8x32xf32, #tpu.memory_space<vmem>>, %arg3: memref<8x32xf32, #tpu.memory_space<vmem>>, %arg4: memref<464x96xf32, #tpu.memory_space<vmem>>, %arg5: memref<8x8xf32, #tpu.memory_space<vmem>>) attributes {dimension_semantics = [#tpu.dimension_semantics<parallel>], iteration_bounds = array<i64: 2>, scalar_prefetch = 0 : i64, scratch_operands = 0 : i64, tpu.core_type = #tpu.core_type<tc>, window_params = [{transform_indices = @transform_0, window_bounds = array<i64: 8, 16>}, {transform_indices = @transform_1, window_bounds = array<i64: 8, 32>}, {transform_indices = @transform_2, window_bounds = array<i64: 8, 32>}, {pipeline_mode = #tpu.pipeline_mode<synchronous>, transform_indices = @transform_3, window_bounds = array<i64: 464, 96>}, {transform_indices = @transform_4, window_bounds = array<i64: 8, 8>}]} {
    %c0 = arith.constant 0 : index
    %c0_0 = arith.constant 0 : index
    %0 = vector.load %arg3[%c0, %c0_0] : memref<8x32xf32, #tpu.memory_space<vmem>>, vector<8x32xf32>
    %c40 = arith.constant 40 : index
    %c0_1 = arith.constant 0 : index
    %1 = vector.load %arg4[%c40, %c0_1] : memref<464x96xf32, #tpu.memory_space<vmem>>, vector<32x64xf32>
    %cst = arith.constant dense<0.000000e+00> : vector<8x64xf32>
    %2 = tpu.matmul %0, %1, %cst {dimension_numbers = #tpu.dot_dimension_numbers<[1], [0], [0], [1], [0, 0, 1, 1], [], []>} : vector<8x32xf32>, vector<32x64xf32>, vector<8x64xf32> -> vector<8x64xf32>
    %c72 = arith.constant 72 : index
    %c0_2 = arith.constant 0 : index
    %3 = vector.load %arg4[%c72, %c0_2] : memref<464x96xf32, #tpu.memory_space<vmem>>, vector<1x64xf32>
    %4 = vector.broadcast %3 : vector<1x64xf32> to vector<8x64xf32>
    %5 = arith.addf %2, %4 : vector<8x64xf32>
    %c0_3 = arith.constant 0 : index
    %c0_4 = arith.constant 0 : index
    %6 = vector.load %arg1[%c0_3, %c0_4] : memref<8x16xf32, #tpu.memory_space<vmem>>, vector<8x16xf32>
    %c200 = arith.constant 200 : index
    %c0_5 = arith.constant 0 : index
    %7 = vector.load %arg4[%c200, %c0_5] : memref<464x96xf32, #tpu.memory_space<vmem>>, vector<16x32xf32>
    %cst_6 = arith.constant dense<0.000000e+00> : vector<8x32xf32>
    %8 = tpu.matmul %6, %7, %cst_6 {dimension_numbers = #tpu.dot_dimension_numbers<[1], [0], [0], [1], [0, 0, 1, 1], [], []>} : vector<8x16xf32>, vector<16x32xf32>, vector<8x32xf32> -> vector<8x32xf32>
    %c216 = arith.constant 216 : index
    %c0_7 = arith.constant 0 : index
    %9 = vector.load %arg4[%c216, %c0_7] : memref<464x96xf32, #tpu.memory_space<vmem>>, vector<1x32xf32>
    %10 = vector.broadcast %9 : vector<1x32xf32> to vector<8x32xf32>
    %11 = arith.addf %8, %10 : vector<8x32xf32>
    %cst_8 = arith.constant 0.000000e+00 : f32
    %12 = vector.broadcast %cst_8 : f32 to vector<8x32xf32>
    %13 = arith.maximumf %11, %12 : vector<8x32xf32>
    %c224 = arith.constant 224 : index
    %c0_9 = arith.constant 0 : index
    %14 = vector.load %arg4[%c224, %c0_9] : memref<464x96xf32, #tpu.memory_space<vmem>>, vector<32x96xf32>
    %cst_10 = arith.constant dense<0.000000e+00> : vector<8x96xf32>
    %15 = tpu.matmul %13, %14, %cst_10 {dimension_numbers = #tpu.dot_dimension_numbers<[1], [0], [0], [1], [0, 0, 1, 1], [], []>} : vector<8x32xf32>, vector<32x96xf32>, vector<8x96xf32> -> vector<8x96xf32>
    %c256 = arith.constant 256 : index
    %c0_11 = arith.constant 0 : index
    %16 = vector.load %arg4[%c256, %c0_11] : memref<464x96xf32, #tpu.memory_space<vmem>>, vector<1x96xf32>
    %17 = vector.broadcast %16 : vector<1x96xf32> to vector<8x96xf32>
    %18 = arith.addf %15, %17 : vector<8x96xf32>
    %c0_12 = arith.constant 0 : index
    %c0_13 = arith.constant 0 : index
    %19 = vector.load %arg2[%c0_12, %c0_13] : memref<8x32xf32, #tpu.memory_space<vmem>>, vector<8x32xf32>
    %c0_14 = arith.constant 0 : index
    %c0_15 = arith.constant 0 : index
    %20 = vector.load %arg4[%c0_14, %c0_15] : memref<464x96xf32, #tpu.memory_space<vmem>>, vector<32x32xf32>
    %c32 = arith.constant 32 : index
    %c0_16 = arith.constant 0 : index
    %21 = vector.load %arg4[%c32, %c0_16] : memref<464x96xf32, #tpu.memory_space<vmem>>, vector<1x32xf32>
    %c80 = arith.constant 80 : index
    %c0_17 = arith.constant 0 : index
    %22 = vector.load %arg4[%c80, %c0_17] : memref<464x96xf32, #tpu.memory_space<vmem>>, vector<32x32xf32>
    %c112 = arith.constant 112 : index
    %c0_18 = arith.constant 0 : index
    %23 = vector.load %arg4[%c112, %c0_18] : memref<464x96xf32, #tpu.memory_space<vmem>>, vector<1x32xf32>
    %c120 = arith.constant 120 : index
    %c0_19 = arith.constant 0 : index
    %24 = vector.load %arg4[%c120, %c0_19] : memref<464x96xf32, #tpu.memory_space<vmem>>, vector<32x96xf32>
    %c152 = arith.constant 152 : index
    %c0_20 = arith.constant 0 : index
    %25 = vector.load %arg4[%c152, %c0_20] : memref<464x96xf32, #tpu.memory_space<vmem>>, vector<1x96xf32>
    %c160 = arith.constant 160 : index
    %c0_21 = arith.constant 0 : index
    %26 = vector.load %arg4[%c160, %c0_21] : memref<464x96xf32, #tpu.memory_space<vmem>>, vector<32x32xf32>
    %c192 = arith.constant 192 : index
    %c0_22 = arith.constant 0 : index
    %27 = vector.load %arg4[%c192, %c0_22] : memref<464x96xf32, #tpu.memory_space<vmem>>, vector<1x32xf32>
    %c264 = arith.constant 264 : index
    %c0_23 = arith.constant 0 : index
    %28 = vector.load %arg4[%c264, %c0_23] : memref<464x96xf32, #tpu.memory_space<vmem>>, vector<32x32xf32>
    %c296 = arith.constant 296 : index
    %c0_24 = arith.constant 0 : index
    %29 = vector.load %arg4[%c296, %c0_24] : memref<464x96xf32, #tpu.memory_space<vmem>>, vector<1x32xf32>
    %c304 = arith.constant 304 : index
    %c0_25 = arith.constant 0 : index
    %30 = vector.load %arg4[%c304, %c0_25] : memref<464x96xf32, #tpu.memory_space<vmem>>, vector<32x32xf32>
    %c336 = arith.constant 336 : index
    %c0_26 = arith.constant 0 : index
    %31 = vector.load %arg4[%c336, %c0_26] : memref<464x96xf32, #tpu.memory_space<vmem>>, vector<1x32xf32>
    %c344 = arith.constant 344 : index
    %c0_27 = arith.constant 0 : index
    %32 = vector.load %arg4[%c344, %c0_27] : memref<464x96xf32, #tpu.memory_space<vmem>>, vector<32x64xf32>
    %c376 = arith.constant 376 : index
    %c0_28 = arith.constant 0 : index
    %33 = vector.load %arg4[%c376, %c0_28] : memref<464x96xf32, #tpu.memory_space<vmem>>, vector<1x64xf32>
    %c384 = arith.constant 384 : index
    %c0_29 = arith.constant 0 : index
    %34 = vector.load %arg4[%c384, %c0_29] : memref<464x96xf32, #tpu.memory_space<vmem>>, vector<32x32xf32>
    %c416 = arith.constant 416 : index
    %c0_30 = arith.constant 0 : index
    %35 = vector.load %arg4[%c416, %c0_30] : memref<464x96xf32, #tpu.memory_space<vmem>>, vector<1x32xf32>
    %36 = vector.extract_strided_slice %0 {offsets = [7, 0], sizes = [1, 32], strides = [1, 1]} : vector<8x32xf32> to vector<1x32xf32>
    %cst_31 = arith.constant dense<0.000000e+00> : vector<1x32xf32>
    %37 = tpu.matmul %36, %20, %cst_31 {dimension_numbers = #tpu.dot_dimension_numbers<[1], [0], [0], [1], [0, 0, 1, 1], [], []>} : vector<1x32xf32>, vector<32x32xf32>, vector<1x32xf32> -> vector<1x32xf32>
    %38 = arith.addf %37, %21 : vector<1x32xf32>
    %39 = vector.extract_strided_slice %5 {offsets = [0, 0], sizes = [8, 32], strides = [1, 1]} : vector<8x64xf32> to vector<8x32xf32>
    %40 = vector.extract_strided_slice %5 {offsets = [0, 32], sizes = [8, 32], strides = [1, 1]} : vector<8x64xf32> to vector<8x32xf32>
    %41 = tpu.transpose %39, [1, 0] : vector<8x32xf32> -> vector<32x8xf32>
    %42 = vector.extract_strided_slice %38 {offsets = [0, 0], sizes = [1, 8], strides = [1, 1]} : vector<1x32xf32> to vector<1x8xf32>
    %43 = vector.extract_strided_slice %41 {offsets = [0, 0], sizes = [8, 8], strides = [1, 1]} : vector<32x8xf32> to vector<8x8xf32>
    %cst_32 = arith.constant dense<0.000000e+00> : vector<1x8xf32>
    %44 = tpu.matmul %42, %43, %cst_32 {dimension_numbers = #tpu.dot_dimension_numbers<[1], [0], [0], [1], [0, 0, 1, 1], [], []>} : vector<1x8xf32>, vector<8x8xf32>, vector<1x8xf32> -> vector<1x8xf32>
    %cst_33 = arith.constant 0.353553385 : f32
    %45 = vector.broadcast %cst_33 : f32 to vector<1x8xf32>
    %46 = arith.mulf %44, %45 : vector<1x8xf32>
    %cst_34 = arith.constant dense<0xFF800000> : vector<1xf32>
    %47 = vector.multi_reduction <maximumf>, %46, %cst_34 [1] : vector<1x8xf32> to vector<1xf32>
    %48 = vector.shape_cast %47 : vector<1xf32> to vector<1x1xf32>
    %49 = vector.broadcast %48 : vector<1x1xf32> to vector<1x8xf32>
    %50 = arith.subf %46, %49 : vector<1x8xf32>
    %51 = math.exp %50 : vector<1x8xf32>
    %cst_35 = arith.constant dense<0.000000e+00> : vector<1xf32>
    %52 = vector.multi_reduction <add>, %51, %cst_35 [1] : vector<1x8xf32> to vector<1xf32>
    %53 = vector.shape_cast %52 : vector<1xf32> to vector<1x1xf32>
    %54 = tpu.reciprocal %53 {approx = true} : vector<1x1xf32> -> vector<1x1xf32>
    %55 = vector.broadcast %54 : vector<1x1xf32> to vector<1x8xf32>
    %56 = arith.mulf %51, %55 : vector<1x8xf32>
    %57 = vector.extract_strided_slice %40 {offsets = [0, 0], sizes = [8, 8], strides = [1, 1]} : vector<8x32xf32> to vector<8x8xf32>
    %cst_36 = arith.constant dense<0.000000e+00> : vector<1x8xf32>
    %58 = tpu.matmul %56, %57, %cst_36 {dimension_numbers = #tpu.dot_dimension_numbers<[1], [0], [0], [1], [0, 0, 1, 1], [], []>} : vector<1x8xf32>, vector<8x8xf32>, vector<1x8xf32> -> vector<1x8xf32>
    %59 = vector.extract_strided_slice %22 {offsets = [0, 0], sizes = [8, 32], strides = [1, 1]} : vector<32x32xf32> to vector<8x32xf32>
    %cst_37 = arith.constant dense<0.000000e+00> : vector<1x32xf32>
    %60 = tpu.matmul %58, %59, %cst_37 {dimension_numbers = #tpu.dot_dimension_numbers<[1], [0], [0], [1], [0, 0, 1, 1], [], []>} : vector<1x8xf32>, vector<8x32xf32>, vector<1x32xf32> -> vector<1x32xf32>
    %61 = vector.extract_strided_slice %38 {offsets = [0, 8], sizes = [1, 8], strides = [1, 1]} : vector<1x32xf32> to vector<1x8xf32>
    %62 = vector.extract_strided_slice %41 {offsets = [8, 0], sizes = [8, 8], strides = [1, 1]} : vector<32x8xf32> to vector<8x8xf32>
    %cst_38 = arith.constant dense<0.000000e+00> : vector<1x8xf32>
    %63 = tpu.matmul %61, %62, %cst_38 {dimension_numbers = #tpu.dot_dimension_numbers<[1], [0], [0], [1], [0, 0, 1, 1], [], []>} : vector<1x8xf32>, vector<8x8xf32>, vector<1x8xf32> -> vector<1x8xf32>
    %cst_39 = arith.constant 0.353553385 : f32
    %64 = vector.broadcast %cst_39 : f32 to vector<1x8xf32>
    %65 = arith.mulf %63, %64 : vector<1x8xf32>
    %cst_40 = arith.constant dense<0xFF800000> : vector<1xf32>
    %66 = vector.multi_reduction <maximumf>, %65, %cst_40 [1] : vector<1x8xf32> to vector<1xf32>
    %67 = vector.shape_cast %66 : vector<1xf32> to vector<1x1xf32>
    %68 = vector.broadcast %67 : vector<1x1xf32> to vector<1x8xf32>
    %69 = arith.subf %65, %68 : vector<1x8xf32>
    %70 = math.exp %69 : vector<1x8xf32>
    %cst_41 = arith.constant dense<0.000000e+00> : vector<1xf32>
    %71 = vector.multi_reduction <add>, %70, %cst_41 [1] : vector<1x8xf32> to vector<1xf32>
    %72 = vector.shape_cast %71 : vector<1xf32> to vector<1x1xf32>
    %73 = tpu.reciprocal %72 {approx = true} : vector<1x1xf32> -> vector<1x1xf32>
    %74 = vector.broadcast %73 : vector<1x1xf32> to vector<1x8xf32>
    %75 = arith.mulf %70, %74 : vector<1x8xf32>
    %76 = vector.extract_strided_slice %40 {offsets = [0, 8], sizes = [8, 8], strides = [1, 1]} : vector<8x32xf32> to vector<8x8xf32>
    %cst_42 = arith.constant dense<0.000000e+00> : vector<1x8xf32>
    %77 = tpu.matmul %75, %76, %cst_42 {dimension_numbers = #tpu.dot_dimension_numbers<[1], [0], [0], [1], [0, 0, 1, 1], [], []>} : vector<1x8xf32>, vector<8x8xf32>, vector<1x8xf32> -> vector<1x8xf32>
    %78 = vector.extract_strided_slice %22 {offsets = [8, 0], sizes = [8, 32], strides = [1, 1]} : vector<32x32xf32> to vector<8x32xf32>
    %cst_43 = arith.constant dense<0.000000e+00> : vector<1x32xf32>
    %79 = tpu.matmul %77, %78, %cst_43 {dimension_numbers = #tpu.dot_dimension_numbers<[1], [0], [0], [1], [0, 0, 1, 1], [], []>} : vector<1x8xf32>, vector<8x32xf32>, vector<1x32xf32> -> vector<1x32xf32>
    %80 = arith.addf %60, %79 : vector<1x32xf32>
    %81 = vector.extract_strided_slice %38 {offsets = [0, 16], sizes = [1, 8], strides = [1, 1]} : vector<1x32xf32> to vector<1x8xf32>
    %82 = vector.extract_strided_slice %41 {offsets = [16, 0], sizes = [8, 8], strides = [1, 1]} : vector<32x8xf32> to vector<8x8xf32>
    %cst_44 = arith.constant dense<0.000000e+00> : vector<1x8xf32>
    %83 = tpu.matmul %81, %82, %cst_44 {dimension_numbers = #tpu.dot_dimension_numbers<[1], [0], [0], [1], [0, 0, 1, 1], [], []>} : vector<1x8xf32>, vector<8x8xf32>, vector<1x8xf32> -> vector<1x8xf32>
    %cst_45 = arith.constant 0.353553385 : f32
    %84 = vector.broadcast %cst_45 : f32 to vector<1x8xf32>
    %85 = arith.mulf %83, %84 : vector<1x8xf32>
    %cst_46 = arith.constant dense<0xFF800000> : vector<1xf32>
    %86 = vector.multi_reduction <maximumf>, %85, %cst_46 [1] : vector<1x8xf32> to vector<1xf32>
    %87 = vector.shape_cast %86 : vector<1xf32> to vector<1x1xf32>
    %88 = vector.broadcast %87 : vector<1x1xf32> to vector<1x8xf32>
    %89 = arith.subf %85, %88 : vector<1x8xf32>
    %90 = math.exp %89 : vector<1x8xf32>
    %cst_47 = arith.constant dense<0.000000e+00> : vector<1xf32>
    %91 = vector.multi_reduction <add>, %90, %cst_47 [1] : vector<1x8xf32> to vector<1xf32>
    %92 = vector.shape_cast %91 : vector<1xf32> to vector<1x1xf32>
    %93 = tpu.reciprocal %92 {approx = true} : vector<1x1xf32> -> vector<1x1xf32>
    %94 = vector.broadcast %93 : vector<1x1xf32> to vector<1x8xf32>
    %95 = arith.mulf %90, %94 : vector<1x8xf32>
    %96 = vector.extract_strided_slice %40 {offsets = [0, 16], sizes = [8, 8], strides = [1, 1]} : vector<8x32xf32> to vector<8x8xf32>
    %cst_48 = arith.constant dense<0.000000e+00> : vector<1x8xf32>
    %97 = tpu.matmul %95, %96, %cst_48 {dimension_numbers = #tpu.dot_dimension_numbers<[1], [0], [0], [1], [0, 0, 1, 1], [], []>} : vector<1x8xf32>, vector<8x8xf32>, vector<1x8xf32> -> vector<1x8xf32>
    %98 = vector.extract_strided_slice %22 {offsets = [16, 0], sizes = [8, 32], strides = [1, 1]} : vector<32x32xf32> to vector<8x32xf32>
    %cst_49 = arith.constant dense<0.000000e+00> : vector<1x32xf32>
    %99 = tpu.matmul %97, %98, %cst_49 {dimension_numbers = #tpu.dot_dimension_numbers<[1], [0], [0], [1], [0, 0, 1, 1], [], []>} : vector<1x8xf32>, vector<8x32xf32>, vector<1x32xf32> -> vector<1x32xf32>
    %100 = arith.addf %80, %99 : vector<1x32xf32>
    %101 = vector.extract_strided_slice %38 {offsets = [0, 24], sizes = [1, 8], strides = [1, 1]} : vector<1x32xf32> to vector<1x8xf32>
    %102 = vector.extract_strided_slice %41 {offsets = [24, 0], sizes = [8, 8], strides = [1, 1]} : vector<32x8xf32> to vector<8x8xf32>
    %cst_50 = arith.constant dense<0.000000e+00> : vector<1x8xf32>
    %103 = tpu.matmul %101, %102, %cst_50 {dimension_numbers = #tpu.dot_dimension_numbers<[1], [0], [0], [1], [0, 0, 1, 1], [], []>} : vector<1x8xf32>, vector<8x8xf32>, vector<1x8xf32> -> vector<1x8xf32>
    %cst_51 = arith.constant 0.353553385 : f32
    %104 = vector.broadcast %cst_51 : f32 to vector<1x8xf32>
    %105 = arith.mulf %103, %104 : vector<1x8xf32>
    %cst_52 = arith.constant dense<0xFF800000> : vector<1xf32>
    %106 = vector.multi_reduction <maximumf>, %105, %cst_52 [1] : vector<1x8xf32> to vector<1xf32>
    %107 = vector.shape_cast %106 : vector<1xf32> to vector<1x1xf32>
    %108 = vector.broadcast %107 : vector<1x1xf32> to vector<1x8xf32>
    %109 = arith.subf %105, %108 : vector<1x8xf32>
    %110 = math.exp %109 : vector<1x8xf32>
    %cst_53 = arith.constant dense<0.000000e+00> : vector<1xf32>
    %111 = vector.multi_reduction <add>, %110, %cst_53 [1] : vector<1x8xf32> to vector<1xf32>
    %112 = vector.shape_cast %111 : vector<1xf32> to vector<1x1xf32>
    %113 = tpu.reciprocal %112 {approx = true} : vector<1x1xf32> -> vector<1x1xf32>
    %114 = vector.broadcast %113 : vector<1x1xf32> to vector<1x8xf32>
    %115 = arith.mulf %110, %114 : vector<1x8xf32>
    %116 = vector.extract_strided_slice %40 {offsets = [0, 24], sizes = [8, 8], strides = [1, 1]} : vector<8x32xf32> to vector<8x8xf32>
    %cst_54 = arith.constant dense<0.000000e+00> : vector<1x8xf32>
    %117 = tpu.matmul %115, %116, %cst_54 {dimension_numbers = #tpu.dot_dimension_numbers<[1], [0], [0], [1], [0, 0, 1, 1], [], []>} : vector<1x8xf32>, vector<8x8xf32>, vector<1x8xf32> -> vector<1x8xf32>
    %118 = vector.extract_strided_slice %22 {offsets = [24, 0], sizes = [8, 32], strides = [1, 1]} : vector<32x32xf32> to vector<8x32xf32>
    %cst_55 = arith.constant dense<0.000000e+00> : vector<1x32xf32>
    %119 = tpu.matmul %117, %118, %cst_55 {dimension_numbers = #tpu.dot_dimension_numbers<[1], [0], [0], [1], [0, 0, 1, 1], [], []>} : vector<1x8xf32>, vector<8x32xf32>, vector<1x32xf32> -> vector<1x32xf32>
    %120 = arith.addf %100, %119 : vector<1x32xf32>
    %121 = arith.addf %120, %23 : vector<1x32xf32>
    %cst_56 = arith.constant 0.000000e+00 : f32
    %122 = vector.broadcast %cst_56 : f32 to vector<1x32xf32>
    %123 = arith.maximumf %121, %122 : vector<1x32xf32>
    %124 = tpu.concatenate %19, %123 in 0 : vector<8x32xf32>, vector<1x32xf32> -> vector<9x32xf32>
    %cst_57 = arith.constant dense<0.000000e+00> : vector<9x96xf32>
    %125 = tpu.matmul %124, %24, %cst_57 {dimension_numbers = #tpu.dot_dimension_numbers<[1], [0], [0], [1], [0, 0, 1, 1], [], []>} : vector<9x32xf32>, vector<32x96xf32>, vector<9x96xf32> -> vector<9x96xf32>
    %126 = vector.broadcast %25 : vector<1x96xf32> to vector<9x96xf32>
    %127 = arith.addf %125, %126 : vector<9x96xf32>
    %128 = vector.extract_strided_slice %127 {offsets = [0, 0], sizes = [9, 32], strides = [1, 1]} : vector<9x96xf32> to vector<9x32xf32>
    %129 = vector.extract_strided_slice %127 {offsets = [0, 32], sizes = [9, 32], strides = [1, 1]} : vector<9x96xf32> to vector<9x32xf32>
    %130 = vector.extract_strided_slice %127 {offsets = [0, 64], sizes = [9, 32], strides = [1, 1]} : vector<9x96xf32> to vector<9x32xf32>
    %131 = tpu.transpose %129, [1, 0] : vector<9x32xf32> -> vector<32x9xf32>
    %132 = vector.extract_strided_slice %128 {offsets = [0, 0], sizes = [9, 8], strides = [1, 1]} : vector<9x32xf32> to vector<9x8xf32>
    %133 = vector.extract_strided_slice %131 {offsets = [0, 0], sizes = [8, 9], strides = [1, 1]} : vector<32x9xf32> to vector<8x9xf32>
    %cst_58 = arith.constant dense<0.000000e+00> : vector<9x9xf32>
    %134 = tpu.matmul %132, %133, %cst_58 {dimension_numbers = #tpu.dot_dimension_numbers<[1], [0], [0], [1], [0, 0, 1, 1], [], []>} : vector<9x8xf32>, vector<8x9xf32>, vector<9x9xf32> -> vector<9x9xf32>
    %cst_59 = arith.constant 0.353553385 : f32
    %135 = vector.broadcast %cst_59 : f32 to vector<9x9xf32>
    %136 = arith.mulf %134, %135 : vector<9x9xf32>
    %cst_60 = arith.constant dense<0xFF800000> : vector<9xf32>
    %137 = vector.multi_reduction <maximumf>, %136, %cst_60 [1] : vector<9x9xf32> to vector<9xf32>
    %138 = vector.shape_cast %137 : vector<9xf32> to vector<9x1xf32>
    %139 = vector.broadcast %138 : vector<9x1xf32> to vector<9x9xf32>
    %140 = arith.subf %136, %139 : vector<9x9xf32>
    %141 = math.exp %140 : vector<9x9xf32>
    %cst_61 = arith.constant dense<0.000000e+00> : vector<9xf32>
    %142 = vector.multi_reduction <add>, %141, %cst_61 [1] : vector<9x9xf32> to vector<9xf32>
    %143 = vector.shape_cast %142 : vector<9xf32> to vector<9x1xf32>
    %144 = tpu.reciprocal %143 {approx = true} : vector<9x1xf32> -> vector<9x1xf32>
    %145 = vector.broadcast %144 : vector<9x1xf32> to vector<9x9xf32>
    %146 = arith.mulf %141, %145 : vector<9x9xf32>
    %147 = vector.extract_strided_slice %130 {offsets = [0, 0], sizes = [9, 8], strides = [1, 1]} : vector<9x32xf32> to vector<9x8xf32>
    %cst_62 = arith.constant dense<0.000000e+00> : vector<9x8xf32>
    %148 = tpu.matmul %146, %147, %cst_62 {dimension_numbers = #tpu.dot_dimension_numbers<[1], [0], [0], [1], [0, 0, 1, 1], [], []>} : vector<9x9xf32>, vector<9x8xf32>, vector<9x8xf32> -> vector<9x8xf32>
    %149 = vector.extract_strided_slice %26 {offsets = [0, 0], sizes = [8, 32], strides = [1, 1]} : vector<32x32xf32> to vector<8x32xf32>
    %cst_63 = arith.constant dense<0.000000e+00> : vector<9x32xf32>
    %150 = tpu.matmul %148, %149, %cst_63 {dimension_numbers = #tpu.dot_dimension_numbers<[1], [0], [0], [1], [0, 0, 1, 1], [], []>} : vector<9x8xf32>, vector<8x32xf32>, vector<9x32xf32> -> vector<9x32xf32>
    %151 = vector.extract_strided_slice %128 {offsets = [0, 8], sizes = [9, 8], strides = [1, 1]} : vector<9x32xf32> to vector<9x8xf32>
    %152 = vector.extract_strided_slice %131 {offsets = [8, 0], sizes = [8, 9], strides = [1, 1]} : vector<32x9xf32> to vector<8x9xf32>
    %cst_64 = arith.constant dense<0.000000e+00> : vector<9x9xf32>
    %153 = tpu.matmul %151, %152, %cst_64 {dimension_numbers = #tpu.dot_dimension_numbers<[1], [0], [0], [1], [0, 0, 1, 1], [], []>} : vector<9x8xf32>, vector<8x9xf32>, vector<9x9xf32> -> vector<9x9xf32>
    %cst_65 = arith.constant 0.353553385 : f32
    %154 = vector.broadcast %cst_65 : f32 to vector<9x9xf32>
    %155 = arith.mulf %153, %154 : vector<9x9xf32>
    %cst_66 = arith.constant dense<0xFF800000> : vector<9xf32>
    %156 = vector.multi_reduction <maximumf>, %155, %cst_66 [1] : vector<9x9xf32> to vector<9xf32>
    %157 = vector.shape_cast %156 : vector<9xf32> to vector<9x1xf32>
    %158 = vector.broadcast %157 : vector<9x1xf32> to vector<9x9xf32>
    %159 = arith.subf %155, %158 : vector<9x9xf32>
    %160 = math.exp %159 : vector<9x9xf32>
    %cst_67 = arith.constant dense<0.000000e+00> : vector<9xf32>
    %161 = vector.multi_reduction <add>, %160, %cst_67 [1] : vector<9x9xf32> to vector<9xf32>
    %162 = vector.shape_cast %161 : vector<9xf32> to vector<9x1xf32>
    %163 = tpu.reciprocal %162 {approx = true} : vector<9x1xf32> -> vector<9x1xf32>
    %164 = vector.broadcast %163 : vector<9x1xf32> to vector<9x9xf32>
    %165 = arith.mulf %160, %164 : vector<9x9xf32>
    %166 = vector.extract_strided_slice %130 {offsets = [0, 8], sizes = [9, 8], strides = [1, 1]} : vector<9x32xf32> to vector<9x8xf32>
    %cst_68 = arith.constant dense<0.000000e+00> : vector<9x8xf32>
    %167 = tpu.matmul %165, %166, %cst_68 {dimension_numbers = #tpu.dot_dimension_numbers<[1], [0], [0], [1], [0, 0, 1, 1], [], []>} : vector<9x9xf32>, vector<9x8xf32>, vector<9x8xf32> -> vector<9x8xf32>
    %168 = vector.extract_strided_slice %26 {offsets = [8, 0], sizes = [8, 32], strides = [1, 1]} : vector<32x32xf32> to vector<8x32xf32>
    %cst_69 = arith.constant dense<0.000000e+00> : vector<9x32xf32>
    %169 = tpu.matmul %167, %168, %cst_69 {dimension_numbers = #tpu.dot_dimension_numbers<[1], [0], [0], [1], [0, 0, 1, 1], [], []>} : vector<9x8xf32>, vector<8x32xf32>, vector<9x32xf32> -> vector<9x32xf32>
    %170 = arith.addf %150, %169 : vector<9x32xf32>
    %171 = vector.extract_strided_slice %128 {offsets = [0, 16], sizes = [9, 8], strides = [1, 1]} : vector<9x32xf32> to vector<9x8xf32>
    %172 = vector.extract_strided_slice %131 {offsets = [16, 0], sizes = [8, 9], strides = [1, 1]} : vector<32x9xf32> to vector<8x9xf32>
    %cst_70 = arith.constant dense<0.000000e+00> : vector<9x9xf32>
    %173 = tpu.matmul %171, %172, %cst_70 {dimension_numbers = #tpu.dot_dimension_numbers<[1], [0], [0], [1], [0, 0, 1, 1], [], []>} : vector<9x8xf32>, vector<8x9xf32>, vector<9x9xf32> -> vector<9x9xf32>
    %cst_71 = arith.constant 0.353553385 : f32
    %174 = vector.broadcast %cst_71 : f32 to vector<9x9xf32>
    %175 = arith.mulf %173, %174 : vector<9x9xf32>
    %cst_72 = arith.constant dense<0xFF800000> : vector<9xf32>
    %176 = vector.multi_reduction <maximumf>, %175, %cst_72 [1] : vector<9x9xf32> to vector<9xf32>
    %177 = vector.shape_cast %176 : vector<9xf32> to vector<9x1xf32>
    %178 = vector.broadcast %177 : vector<9x1xf32> to vector<9x9xf32>
    %179 = arith.subf %175, %178 : vector<9x9xf32>
    %180 = math.exp %179 : vector<9x9xf32>
    %cst_73 = arith.constant dense<0.000000e+00> : vector<9xf32>
    %181 = vector.multi_reduction <add>, %180, %cst_73 [1] : vector<9x9xf32> to vector<9xf32>
    %182 = vector.shape_cast %181 : vector<9xf32> to vector<9x1xf32>
    %183 = tpu.reciprocal %182 {approx = true} : vector<9x1xf32> -> vector<9x1xf32>
    %184 = vector.broadcast %183 : vector<9x1xf32> to vector<9x9xf32>
    %185 = arith.mulf %180, %184 : vector<9x9xf32>
    %186 = vector.extract_strided_slice %130 {offsets = [0, 16], sizes = [9, 8], strides = [1, 1]} : vector<9x32xf32> to vector<9x8xf32>
    %cst_74 = arith.constant dense<0.000000e+00> : vector<9x8xf32>
    %187 = tpu.matmul %185, %186, %cst_74 {dimension_numbers = #tpu.dot_dimension_numbers<[1], [0], [0], [1], [0, 0, 1, 1], [], []>} : vector<9x9xf32>, vector<9x8xf32>, vector<9x8xf32> -> vector<9x8xf32>
    %188 = vector.extract_strided_slice %26 {offsets = [16, 0], sizes = [8, 32], strides = [1, 1]} : vector<32x32xf32> to vector<8x32xf32>
    %cst_75 = arith.constant dense<0.000000e+00> : vector<9x32xf32>
    %189 = tpu.matmul %187, %188, %cst_75 {dimension_numbers = #tpu.dot_dimension_numbers<[1], [0], [0], [1], [0, 0, 1, 1], [], []>} : vector<9x8xf32>, vector<8x32xf32>, vector<9x32xf32> -> vector<9x32xf32>
    %190 = arith.addf %170, %189 : vector<9x32xf32>
    %191 = vector.extract_strided_slice %128 {offsets = [0, 24], sizes = [9, 8], strides = [1, 1]} : vector<9x32xf32> to vector<9x8xf32>
    %192 = vector.extract_strided_slice %131 {offsets = [24, 0], sizes = [8, 9], strides = [1, 1]} : vector<32x9xf32> to vector<8x9xf32>
    %cst_76 = arith.constant dense<0.000000e+00> : vector<9x9xf32>
    %193 = tpu.matmul %191, %192, %cst_76 {dimension_numbers = #tpu.dot_dimension_numbers<[1], [0], [0], [1], [0, 0, 1, 1], [], []>} : vector<9x8xf32>, vector<8x9xf32>, vector<9x9xf32> -> vector<9x9xf32>
    %cst_77 = arith.constant 0.353553385 : f32
    %194 = vector.broadcast %cst_77 : f32 to vector<9x9xf32>
    %195 = arith.mulf %193, %194 : vector<9x9xf32>
    %cst_78 = arith.constant dense<0xFF800000> : vector<9xf32>
    %196 = vector.multi_reduction <maximumf>, %195, %cst_78 [1] : vector<9x9xf32> to vector<9xf32>
    %197 = vector.shape_cast %196 : vector<9xf32> to vector<9x1xf32>
    %198 = vector.broadcast %197 : vector<9x1xf32> to vector<9x9xf32>
    %199 = arith.subf %195, %198 : vector<9x9xf32>
    %200 = math.exp %199 : vector<9x9xf32>
    %cst_79 = arith.constant dense<0.000000e+00> : vector<9xf32>
    %201 = vector.multi_reduction <add>, %200, %cst_79 [1] : vector<9x9xf32> to vector<9xf32>
    %202 = vector.shape_cast %201 : vector<9xf32> to vector<9x1xf32>
    %203 = tpu.reciprocal %202 {approx = true} : vector<9x1xf32> -> vector<9x1xf32>
    %204 = vector.broadcast %203 : vector<9x1xf32> to vector<9x9xf32>
    %205 = arith.mulf %200, %204 : vector<9x9xf32>
    %206 = vector.extract_strided_slice %130 {offsets = [0, 24], sizes = [9, 8], strides = [1, 1]} : vector<9x32xf32> to vector<9x8xf32>
    %cst_80 = arith.constant dense<0.000000e+00> : vector<9x8xf32>
    %207 = tpu.matmul %205, %206, %cst_80 {dimension_numbers = #tpu.dot_dimension_numbers<[1], [0], [0], [1], [0, 0, 1, 1], [], []>} : vector<9x9xf32>, vector<9x8xf32>, vector<9x8xf32> -> vector<9x8xf32>
    %208 = vector.extract_strided_slice %26 {offsets = [24, 0], sizes = [8, 32], strides = [1, 1]} : vector<32x32xf32> to vector<8x32xf32>
    %cst_81 = arith.constant dense<0.000000e+00> : vector<9x32xf32>
    %209 = tpu.matmul %207, %208, %cst_81 {dimension_numbers = #tpu.dot_dimension_numbers<[1], [0], [0], [1], [0, 0, 1, 1], [], []>} : vector<9x8xf32>, vector<8x32xf32>, vector<9x32xf32> -> vector<9x32xf32>
    %210 = arith.addf %190, %209 : vector<9x32xf32>
    %211 = vector.broadcast %27 : vector<1x32xf32> to vector<9x32xf32>
    %212 = arith.addf %210, %211 : vector<9x32xf32>
    %213 = vector.extract_strided_slice %18 {offsets = [0, 0], sizes = [8, 32], strides = [1, 1]} : vector<8x96xf32> to vector<8x32xf32>
    %214 = vector.extract_strided_slice %18 {offsets = [0, 32], sizes = [8, 32], strides = [1, 1]} : vector<8x96xf32> to vector<8x32xf32>
    %215 = vector.extract_strided_slice %18 {offsets = [0, 64], sizes = [8, 32], strides = [1, 1]} : vector<8x96xf32> to vector<8x32xf32>
    %216 = tpu.transpose %214, [1, 0] : vector<8x32xf32> -> vector<32x8xf32>
    %217 = vector.extract_strided_slice %213 {offsets = [0, 0], sizes = [8, 8], strides = [1, 1]} : vector<8x32xf32> to vector<8x8xf32>
    %218 = vector.extract_strided_slice %216 {offsets = [0, 0], sizes = [8, 8], strides = [1, 1]} : vector<32x8xf32> to vector<8x8xf32>
    %cst_82 = arith.constant dense<0.000000e+00> : vector<8x8xf32>
    %219 = tpu.matmul %217, %218, %cst_82 {dimension_numbers = #tpu.dot_dimension_numbers<[1], [0], [0], [1], [0, 0, 1, 1], [], []>} : vector<8x8xf32>, vector<8x8xf32>, vector<8x8xf32> -> vector<8x8xf32>
    %cst_83 = arith.constant 0.353553385 : f32
    %220 = vector.broadcast %cst_83 : f32 to vector<8x8xf32>
    %221 = arith.mulf %219, %220 : vector<8x8xf32>
    %cst_84 = arith.constant dense<0xFF800000> : vector<8xf32>
    %222 = vector.multi_reduction <maximumf>, %221, %cst_84 [1] : vector<8x8xf32> to vector<8xf32>
    %223 = vector.shape_cast %222 : vector<8xf32> to vector<8x1xf32>
    %224 = vector.broadcast %223 : vector<8x1xf32> to vector<8x8xf32>
    %225 = arith.subf %221, %224 : vector<8x8xf32>
    %226 = math.exp %225 : vector<8x8xf32>
    %cst_85 = arith.constant dense<0.000000e+00> : vector<8xf32>
    %227 = vector.multi_reduction <add>, %226, %cst_85 [1] : vector<8x8xf32> to vector<8xf32>
    %228 = vector.shape_cast %227 : vector<8xf32> to vector<8x1xf32>
    %229 = tpu.reciprocal %228 {approx = true} : vector<8x1xf32> -> vector<8x1xf32>
    %230 = vector.broadcast %229 : vector<8x1xf32> to vector<8x8xf32>
    %231 = arith.mulf %226, %230 : vector<8x8xf32>
    %232 = vector.extract_strided_slice %215 {offsets = [0, 0], sizes = [8, 8], strides = [1, 1]} : vector<8x32xf32> to vector<8x8xf32>
    %cst_86 = arith.constant dense<0.000000e+00> : vector<8x8xf32>
    %233 = tpu.matmul %231, %232, %cst_86 {dimension_numbers = #tpu.dot_dimension_numbers<[1], [0], [0], [1], [0, 0, 1, 1], [], []>} : vector<8x8xf32>, vector<8x8xf32>, vector<8x8xf32> -> vector<8x8xf32>
    %234 = vector.extract_strided_slice %28 {offsets = [0, 0], sizes = [8, 32], strides = [1, 1]} : vector<32x32xf32> to vector<8x32xf32>
    %cst_87 = arith.constant dense<0.000000e+00> : vector<8x32xf32>
    %235 = tpu.matmul %233, %234, %cst_87 {dimension_numbers = #tpu.dot_dimension_numbers<[1], [0], [0], [1], [0, 0, 1, 1], [], []>} : vector<8x8xf32>, vector<8x32xf32>, vector<8x32xf32> -> vector<8x32xf32>
    %236 = vector.extract_strided_slice %213 {offsets = [0, 8], sizes = [8, 8], strides = [1, 1]} : vector<8x32xf32> to vector<8x8xf32>
    %237 = vector.extract_strided_slice %216 {offsets = [8, 0], sizes = [8, 8], strides = [1, 1]} : vector<32x8xf32> to vector<8x8xf32>
    %cst_88 = arith.constant dense<0.000000e+00> : vector<8x8xf32>
    %238 = tpu.matmul %236, %237, %cst_88 {dimension_numbers = #tpu.dot_dimension_numbers<[1], [0], [0], [1], [0, 0, 1, 1], [], []>} : vector<8x8xf32>, vector<8x8xf32>, vector<8x8xf32> -> vector<8x8xf32>
    %cst_89 = arith.constant 0.353553385 : f32
    %239 = vector.broadcast %cst_89 : f32 to vector<8x8xf32>
    %240 = arith.mulf %238, %239 : vector<8x8xf32>
    %cst_90 = arith.constant dense<0xFF800000> : vector<8xf32>
    %241 = vector.multi_reduction <maximumf>, %240, %cst_90 [1] : vector<8x8xf32> to vector<8xf32>
    %242 = vector.shape_cast %241 : vector<8xf32> to vector<8x1xf32>
    %243 = vector.broadcast %242 : vector<8x1xf32> to vector<8x8xf32>
    %244 = arith.subf %240, %243 : vector<8x8xf32>
    %245 = math.exp %244 : vector<8x8xf32>
    %cst_91 = arith.constant dense<0.000000e+00> : vector<8xf32>
    %246 = vector.multi_reduction <add>, %245, %cst_91 [1] : vector<8x8xf32> to vector<8xf32>
    %247 = vector.shape_cast %246 : vector<8xf32> to vector<8x1xf32>
    %248 = tpu.reciprocal %247 {approx = true} : vector<8x1xf32> -> vector<8x1xf32>
    %249 = vector.broadcast %248 : vector<8x1xf32> to vector<8x8xf32>
    %250 = arith.mulf %245, %249 : vector<8x8xf32>
    %251 = vector.extract_strided_slice %215 {offsets = [0, 8], sizes = [8, 8], strides = [1, 1]} : vector<8x32xf32> to vector<8x8xf32>
    %cst_92 = arith.constant dense<0.000000e+00> : vector<8x8xf32>
    %252 = tpu.matmul %250, %251, %cst_92 {dimension_numbers = #tpu.dot_dimension_numbers<[1], [0], [0], [1], [0, 0, 1, 1], [], []>} : vector<8x8xf32>, vector<8x8xf32>, vector<8x8xf32> -> vector<8x8xf32>
    %253 = vector.extract_strided_slice %28 {offsets = [8, 0], sizes = [8, 32], strides = [1, 1]} : vector<32x32xf32> to vector<8x32xf32>
    %cst_93 = arith.constant dense<0.000000e+00> : vector<8x32xf32>
    %254 = tpu.matmul %252, %253, %cst_93 {dimension_numbers = #tpu.dot_dimension_numbers<[1], [0], [0], [1], [0, 0, 1, 1], [], []>} : vector<8x8xf32>, vector<8x32xf32>, vector<8x32xf32> -> vector<8x32xf32>
    %255 = arith.addf %235, %254 : vector<8x32xf32>
    %256 = vector.extract_strided_slice %213 {offsets = [0, 16], sizes = [8, 8], strides = [1, 1]} : vector<8x32xf32> to vector<8x8xf32>
    %257 = vector.extract_strided_slice %216 {offsets = [16, 0], sizes = [8, 8], strides = [1, 1]} : vector<32x8xf32> to vector<8x8xf32>
    %cst_94 = arith.constant dense<0.000000e+00> : vector<8x8xf32>
    %258 = tpu.matmul %256, %257, %cst_94 {dimension_numbers = #tpu.dot_dimension_numbers<[1], [0], [0], [1], [0, 0, 1, 1], [], []>} : vector<8x8xf32>, vector<8x8xf32>, vector<8x8xf32> -> vector<8x8xf32>
    %cst_95 = arith.constant 0.353553385 : f32
    %259 = vector.broadcast %cst_95 : f32 to vector<8x8xf32>
    %260 = arith.mulf %258, %259 : vector<8x8xf32>
    %cst_96 = arith.constant dense<0xFF800000> : vector<8xf32>
    %261 = vector.multi_reduction <maximumf>, %260, %cst_96 [1] : vector<8x8xf32> to vector<8xf32>
    %262 = vector.shape_cast %261 : vector<8xf32> to vector<8x1xf32>
    %263 = vector.broadcast %262 : vector<8x1xf32> to vector<8x8xf32>
    %264 = arith.subf %260, %263 : vector<8x8xf32>
    %265 = math.exp %264 : vector<8x8xf32>
    %cst_97 = arith.constant dense<0.000000e+00> : vector<8xf32>
    %266 = vector.multi_reduction <add>, %265, %cst_97 [1] : vector<8x8xf32> to vector<8xf32>
    %267 = vector.shape_cast %266 : vector<8xf32> to vector<8x1xf32>
    %268 = tpu.reciprocal %267 {approx = true} : vector<8x1xf32> -> vector<8x1xf32>
    %269 = vector.broadcast %268 : vector<8x1xf32> to vector<8x8xf32>
    %270 = arith.mulf %265, %269 : vector<8x8xf32>
    %271 = vector.extract_strided_slice %215 {offsets = [0, 16], sizes = [8, 8], strides = [1, 1]} : vector<8x32xf32> to vector<8x8xf32>
    %cst_98 = arith.constant dense<0.000000e+00> : vector<8x8xf32>
    %272 = tpu.matmul %270, %271, %cst_98 {dimension_numbers = #tpu.dot_dimension_numbers<[1], [0], [0], [1], [0, 0, 1, 1], [], []>} : vector<8x8xf32>, vector<8x8xf32>, vector<8x8xf32> -> vector<8x8xf32>
    %273 = vector.extract_strided_slice %28 {offsets = [16, 0], sizes = [8, 32], strides = [1, 1]} : vector<32x32xf32> to vector<8x32xf32>
    %cst_99 = arith.constant dense<0.000000e+00> : vector<8x32xf32>
    %274 = tpu.matmul %272, %273, %cst_99 {dimension_numbers = #tpu.dot_dimension_numbers<[1], [0], [0], [1], [0, 0, 1, 1], [], []>} : vector<8x8xf32>, vector<8x32xf32>, vector<8x32xf32> -> vector<8x32xf32>
    %275 = arith.addf %255, %274 : vector<8x32xf32>
    %276 = vector.extract_strided_slice %213 {offsets = [0, 24], sizes = [8, 8], strides = [1, 1]} : vector<8x32xf32> to vector<8x8xf32>
    %277 = vector.extract_strided_slice %216 {offsets = [24, 0], sizes = [8, 8], strides = [1, 1]} : vector<32x8xf32> to vector<8x8xf32>
    %cst_100 = arith.constant dense<0.000000e+00> : vector<8x8xf32>
    %278 = tpu.matmul %276, %277, %cst_100 {dimension_numbers = #tpu.dot_dimension_numbers<[1], [0], [0], [1], [0, 0, 1, 1], [], []>} : vector<8x8xf32>, vector<8x8xf32>, vector<8x8xf32> -> vector<8x8xf32>
    %cst_101 = arith.constant 0.353553385 : f32
    %279 = vector.broadcast %cst_101 : f32 to vector<8x8xf32>
    %280 = arith.mulf %278, %279 : vector<8x8xf32>
    %cst_102 = arith.constant dense<0xFF800000> : vector<8xf32>
    %281 = vector.multi_reduction <maximumf>, %280, %cst_102 [1] : vector<8x8xf32> to vector<8xf32>
    %282 = vector.shape_cast %281 : vector<8xf32> to vector<8x1xf32>
    %283 = vector.broadcast %282 : vector<8x1xf32> to vector<8x8xf32>
    %284 = arith.subf %280, %283 : vector<8x8xf32>
    %285 = math.exp %284 : vector<8x8xf32>
    %cst_103 = arith.constant dense<0.000000e+00> : vector<8xf32>
    %286 = vector.multi_reduction <add>, %285, %cst_103 [1] : vector<8x8xf32> to vector<8xf32>
    %287 = vector.shape_cast %286 : vector<8xf32> to vector<8x1xf32>
    %288 = tpu.reciprocal %287 {approx = true} : vector<8x1xf32> -> vector<8x1xf32>
    %289 = vector.broadcast %288 : vector<8x1xf32> to vector<8x8xf32>
    %290 = arith.mulf %285, %289 : vector<8x8xf32>
    %291 = vector.extract_strided_slice %215 {offsets = [0, 24], sizes = [8, 8], strides = [1, 1]} : vector<8x32xf32> to vector<8x8xf32>
    %cst_104 = arith.constant dense<0.000000e+00> : vector<8x8xf32>
    %292 = tpu.matmul %290, %291, %cst_104 {dimension_numbers = #tpu.dot_dimension_numbers<[1], [0], [0], [1], [0, 0, 1, 1], [], []>} : vector<8x8xf32>, vector<8x8xf32>, vector<8x8xf32> -> vector<8x8xf32>
    %293 = vector.extract_strided_slice %28 {offsets = [24, 0], sizes = [8, 32], strides = [1, 1]} : vector<32x32xf32> to vector<8x32xf32>
    %cst_105 = arith.constant dense<0.000000e+00> : vector<8x32xf32>
    %294 = tpu.matmul %292, %293, %cst_105 {dimension_numbers = #tpu.dot_dimension_numbers<[1], [0], [0], [1], [0, 0, 1, 1], [], []>} : vector<8x8xf32>, vector<8x32xf32>, vector<8x32xf32> -> vector<8x32xf32>
    %295 = arith.addf %275, %294 : vector<8x32xf32>
    %296 = vector.broadcast %29 : vector<1x32xf32> to vector<8x32xf32>
    %297 = arith.addf %295, %296 : vector<8x32xf32>
    %cst_106 = arith.constant dense<0.000000e+00> : vector<8x32xf32>
    %298 = tpu.matmul %297, %30, %cst_106 {dimension_numbers = #tpu.dot_dimension_numbers<[1], [0], [0], [1], [0, 0, 1, 1], [], []>} : vector<8x32xf32>, vector<32x32xf32>, vector<8x32xf32> -> vector<8x32xf32>
    %299 = vector.broadcast %31 : vector<1x32xf32> to vector<8x32xf32>
    %300 = arith.addf %298, %299 : vector<8x32xf32>
    %cst_107 = arith.constant dense<0.000000e+00> : vector<9x64xf32>
    %301 = tpu.matmul %212, %32, %cst_107 {dimension_numbers = #tpu.dot_dimension_numbers<[1], [0], [0], [1], [0, 0, 1, 1], [], []>} : vector<9x32xf32>, vector<32x64xf32>, vector<9x64xf32> -> vector<9x64xf32>
    %302 = vector.broadcast %33 : vector<1x64xf32> to vector<9x64xf32>
    %303 = arith.addf %301, %302 : vector<9x64xf32>
    %304 = vector.extract_strided_slice %303 {offsets = [0, 0], sizes = [9, 32], strides = [1, 1]} : vector<9x64xf32> to vector<9x32xf32>
    %305 = vector.extract_strided_slice %303 {offsets = [0, 32], sizes = [9, 32], strides = [1, 1]} : vector<9x64xf32> to vector<9x32xf32>
    %306 = tpu.transpose %304, [1, 0] : vector<9x32xf32> -> vector<32x9xf32>
    %307 = vector.extract_strided_slice %300 {offsets = [0, 0], sizes = [8, 8], strides = [1, 1]} : vector<8x32xf32> to vector<8x8xf32>
    %308 = vector.extract_strided_slice %306 {offsets = [0, 0], sizes = [8, 9], strides = [1, 1]} : vector<32x9xf32> to vector<8x9xf32>
    %cst_108 = arith.constant dense<0.000000e+00> : vector<8x9xf32>
    %309 = tpu.matmul %307, %308, %cst_108 {dimension_numbers = #tpu.dot_dimension_numbers<[1], [0], [0], [1], [0, 0, 1, 1], [], []>} : vector<8x8xf32>, vector<8x9xf32>, vector<8x9xf32> -> vector<8x9xf32>
    %cst_109 = arith.constant 0.353553385 : f32
    %310 = vector.broadcast %cst_109 : f32 to vector<8x9xf32>
    %311 = arith.mulf %309, %310 : vector<8x9xf32>
    %cst_110 = arith.constant dense<0xFF800000> : vector<8xf32>
    %312 = vector.multi_reduction <maximumf>, %311, %cst_110 [1] : vector<8x9xf32> to vector<8xf32>
    %313 = vector.shape_cast %312 : vector<8xf32> to vector<8x1xf32>
    %314 = vector.broadcast %313 : vector<8x1xf32> to vector<8x9xf32>
    %315 = arith.subf %311, %314 : vector<8x9xf32>
    %316 = math.exp %315 : vector<8x9xf32>
    %cst_111 = arith.constant dense<0.000000e+00> : vector<8xf32>
    %317 = vector.multi_reduction <add>, %316, %cst_111 [1] : vector<8x9xf32> to vector<8xf32>
    %318 = vector.shape_cast %317 : vector<8xf32> to vector<8x1xf32>
    %319 = tpu.reciprocal %318 {approx = true} : vector<8x1xf32> -> vector<8x1xf32>
    %320 = vector.broadcast %319 : vector<8x1xf32> to vector<8x9xf32>
    %321 = arith.mulf %316, %320 : vector<8x9xf32>
    %322 = vector.extract_strided_slice %305 {offsets = [0, 0], sizes = [9, 8], strides = [1, 1]} : vector<9x32xf32> to vector<9x8xf32>
    %cst_112 = arith.constant dense<0.000000e+00> : vector<8x8xf32>
    %323 = tpu.matmul %321, %322, %cst_112 {dimension_numbers = #tpu.dot_dimension_numbers<[1], [0], [0], [1], [0, 0, 1, 1], [], []>} : vector<8x9xf32>, vector<9x8xf32>, vector<8x8xf32> -> vector<8x8xf32>
    %324 = vector.extract_strided_slice %34 {offsets = [0, 0], sizes = [8, 32], strides = [1, 1]} : vector<32x32xf32> to vector<8x32xf32>
    %cst_113 = arith.constant dense<0.000000e+00> : vector<8x32xf32>
    %325 = tpu.matmul %323, %324, %cst_113 {dimension_numbers = #tpu.dot_dimension_numbers<[1], [0], [0], [1], [0, 0, 1, 1], [], []>} : vector<8x8xf32>, vector<8x32xf32>, vector<8x32xf32> -> vector<8x32xf32>
    %326 = vector.extract_strided_slice %300 {offsets = [0, 8], sizes = [8, 8], strides = [1, 1]} : vector<8x32xf32> to vector<8x8xf32>
    %327 = vector.extract_strided_slice %306 {offsets = [8, 0], sizes = [8, 9], strides = [1, 1]} : vector<32x9xf32> to vector<8x9xf32>
    %cst_114 = arith.constant dense<0.000000e+00> : vector<8x9xf32>
    %328 = tpu.matmul %326, %327, %cst_114 {dimension_numbers = #tpu.dot_dimension_numbers<[1], [0], [0], [1], [0, 0, 1, 1], [], []>} : vector<8x8xf32>, vector<8x9xf32>, vector<8x9xf32> -> vector<8x9xf32>
    %cst_115 = arith.constant 0.353553385 : f32
    %329 = vector.broadcast %cst_115 : f32 to vector<8x9xf32>
    %330 = arith.mulf %328, %329 : vector<8x9xf32>
    %cst_116 = arith.constant dense<0xFF800000> : vector<8xf32>
    %331 = vector.multi_reduction <maximumf>, %330, %cst_116 [1] : vector<8x9xf32> to vector<8xf32>
    %332 = vector.shape_cast %331 : vector<8xf32> to vector<8x1xf32>
    %333 = vector.broadcast %332 : vector<8x1xf32> to vector<8x9xf32>
    %334 = arith.subf %330, %333 : vector<8x9xf32>
    %335 = math.exp %334 : vector<8x9xf32>
    %cst_117 = arith.constant dense<0.000000e+00> : vector<8xf32>
    %336 = vector.multi_reduction <add>, %335, %cst_117 [1] : vector<8x9xf32> to vector<8xf32>
    %337 = vector.shape_cast %336 : vector<8xf32> to vector<8x1xf32>
    %338 = tpu.reciprocal %337 {approx = true} : vector<8x1xf32> -> vector<8x1xf32>
    %339 = vector.broadcast %338 : vector<8x1xf32> to vector<8x9xf32>
    %340 = arith.mulf %335, %339 : vector<8x9xf32>
    %341 = vector.extract_strided_slice %305 {offsets = [0, 8], sizes = [9, 8], strides = [1, 1]} : vector<9x32xf32> to vector<9x8xf32>
    %cst_118 = arith.constant dense<0.000000e+00> : vector<8x8xf32>
    %342 = tpu.matmul %340, %341, %cst_118 {dimension_numbers = #tpu.dot_dimension_numbers<[1], [0], [0], [1], [0, 0, 1, 1], [], []>} : vector<8x9xf32>, vector<9x8xf32>, vector<8x8xf32> -> vector<8x8xf32>
    %343 = vector.extract_strided_slice %34 {offsets = [8, 0], sizes = [8, 32], strides = [1, 1]} : vector<32x32xf32> to vector<8x32xf32>
    %cst_119 = arith.constant dense<0.000000e+00> : vector<8x32xf32>
    %344 = tpu.matmul %342, %343, %cst_119 {dimension_numbers = #tpu.dot_dimension_numbers<[1], [0], [0], [1], [0, 0, 1, 1], [], []>} : vector<8x8xf32>, vector<8x32xf32>, vector<8x32xf32> -> vector<8x32xf32>
    %345 = arith.addf %325, %344 : vector<8x32xf32>
    %346 = vector.extract_strided_slice %300 {offsets = [0, 16], sizes = [8, 8], strides = [1, 1]} : vector<8x32xf32> to vector<8x8xf32>
    %347 = vector.extract_strided_slice %306 {offsets = [16, 0], sizes = [8, 9], strides = [1, 1]} : vector<32x9xf32> to vector<8x9xf32>
    %cst_120 = arith.constant dense<0.000000e+00> : vector<8x9xf32>
    %348 = tpu.matmul %346, %347, %cst_120 {dimension_numbers = #tpu.dot_dimension_numbers<[1], [0], [0], [1], [0, 0, 1, 1], [], []>} : vector<8x8xf32>, vector<8x9xf32>, vector<8x9xf32> -> vector<8x9xf32>
    %cst_121 = arith.constant 0.353553385 : f32
    %349 = vector.broadcast %cst_121 : f32 to vector<8x9xf32>
    %350 = arith.mulf %348, %349 : vector<8x9xf32>
    %cst_122 = arith.constant dense<0xFF800000> : vector<8xf32>
    %351 = vector.multi_reduction <maximumf>, %350, %cst_122 [1] : vector<8x9xf32> to vector<8xf32>
    %352 = vector.shape_cast %351 : vector<8xf32> to vector<8x1xf32>
    %353 = vector.broadcast %352 : vector<8x1xf32> to vector<8x9xf32>
    %354 = arith.subf %350, %353 : vector<8x9xf32>
    %355 = math.exp %354 : vector<8x9xf32>
    %cst_123 = arith.constant dense<0.000000e+00> : vector<8xf32>
    %356 = vector.multi_reduction <add>, %355, %cst_123 [1] : vector<8x9xf32> to vector<8xf32>
    %357 = vector.shape_cast %356 : vector<8xf32> to vector<8x1xf32>
    %358 = tpu.reciprocal %357 {approx = true} : vector<8x1xf32> -> vector<8x1xf32>
    %359 = vector.broadcast %358 : vector<8x1xf32> to vector<8x9xf32>
    %360 = arith.mulf %355, %359 : vector<8x9xf32>
    %361 = vector.extract_strided_slice %305 {offsets = [0, 16], sizes = [9, 8], strides = [1, 1]} : vector<9x32xf32> to vector<9x8xf32>
    %cst_124 = arith.constant dense<0.000000e+00> : vector<8x8xf32>
    %362 = tpu.matmul %360, %361, %cst_124 {dimension_numbers = #tpu.dot_dimension_numbers<[1], [0], [0], [1], [0, 0, 1, 1], [], []>} : vector<8x9xf32>, vector<9x8xf32>, vector<8x8xf32> -> vector<8x8xf32>
    %363 = vector.extract_strided_slice %34 {offsets = [16, 0], sizes = [8, 32], strides = [1, 1]} : vector<32x32xf32> to vector<8x32xf32>
    %cst_125 = arith.constant dense<0.000000e+00> : vector<8x32xf32>
    %364 = tpu.matmul %362, %363, %cst_125 {dimension_numbers = #tpu.dot_dimension_numbers<[1], [0], [0], [1], [0, 0, 1, 1], [], []>} : vector<8x8xf32>, vector<8x32xf32>, vector<8x32xf32> -> vector<8x32xf32>
    %365 = arith.addf %345, %364 : vector<8x32xf32>
    %366 = vector.extract_strided_slice %300 {offsets = [0, 24], sizes = [8, 8], strides = [1, 1]} : vector<8x32xf32> to vector<8x8xf32>
    %367 = vector.extract_strided_slice %306 {offsets = [24, 0], sizes = [8, 9], strides = [1, 1]} : vector<32x9xf32> to vector<8x9xf32>
    %cst_126 = arith.constant dense<0.000000e+00> : vector<8x9xf32>
    %368 = tpu.matmul %366, %367, %cst_126 {dimension_numbers = #tpu.dot_dimension_numbers<[1], [0], [0], [1], [0, 0, 1, 1], [], []>} : vector<8x8xf32>, vector<8x9xf32>, vector<8x9xf32> -> vector<8x9xf32>
    %cst_127 = arith.constant 0.353553385 : f32
    %369 = vector.broadcast %cst_127 : f32 to vector<8x9xf32>
    %370 = arith.mulf %368, %369 : vector<8x9xf32>
    %cst_128 = arith.constant dense<0xFF800000> : vector<8xf32>
    %371 = vector.multi_reduction <maximumf>, %370, %cst_128 [1] : vector<8x9xf32> to vector<8xf32>
    %372 = vector.shape_cast %371 : vector<8xf32> to vector<8x1xf32>
    %373 = vector.broadcast %372 : vector<8x1xf32> to vector<8x9xf32>
    %374 = arith.subf %370, %373 : vector<8x9xf32>
    %375 = math.exp %374 : vector<8x9xf32>
    %cst_129 = arith.constant dense<0.000000e+00> : vector<8xf32>
    %376 = vector.multi_reduction <add>, %375, %cst_129 [1] : vector<8x9xf32> to vector<8xf32>
    %377 = vector.shape_cast %376 : vector<8xf32> to vector<8x1xf32>
    %378 = tpu.reciprocal %377 {approx = true} : vector<8x1xf32> -> vector<8x1xf32>
    %379 = vector.broadcast %378 : vector<8x1xf32> to vector<8x9xf32>
    %380 = arith.mulf %375, %379 : vector<8x9xf32>
    %381 = vector.extract_strided_slice %305 {offsets = [0, 24], sizes = [9, 8], strides = [1, 1]} : vector<9x32xf32> to vector<9x8xf32>
    %cst_130 = arith.constant dense<0.000000e+00> : vector<8x8xf32>
    %382 = tpu.matmul %380, %381, %cst_130 {dimension_numbers = #tpu.dot_dimension_numbers<[1], [0], [0], [1], [0, 0, 1, 1], [], []>} : vector<8x9xf32>, vector<9x8xf32>, vector<8x8xf32> -> vector<8x8xf32>
    %383 = vector.extract_strided_slice %34 {offsets = [24, 0], sizes = [8, 32], strides = [1, 1]} : vector<32x32xf32> to vector<8x32xf32>
    %cst_131 = arith.constant dense<0.000000e+00> : vector<8x32xf32>
    %384 = tpu.matmul %382, %383, %cst_131 {dimension_numbers = #tpu.dot_dimension_numbers<[1], [0], [0], [1], [0, 0, 1, 1], [], []>} : vector<8x8xf32>, vector<8x32xf32>, vector<8x32xf32> -> vector<8x32xf32>
    %385 = arith.addf %365, %384 : vector<8x32xf32>
    %386 = vector.broadcast %35 : vector<1x32xf32> to vector<8x32xf32>
    %387 = arith.addf %385, %386 : vector<8x32xf32>
    %c424 = arith.constant 424 : index
    %c0_132 = arith.constant 0 : index
    %388 = vector.load %arg4[%c424, %c0_132] : memref<464x96xf32, #tpu.memory_space<vmem>>, vector<32x8xf32>
    %cst_133 = arith.constant dense<0.000000e+00> : vector<8x8xf32>
    %389 = tpu.matmul %387, %388, %cst_133 {dimension_numbers = #tpu.dot_dimension_numbers<[1], [0], [0], [1], [0, 0, 1, 1], [], []>} : vector<8x32xf32>, vector<32x8xf32>, vector<8x8xf32> -> vector<8x8xf32>
    %c456 = arith.constant 456 : index
    %c0_134 = arith.constant 0 : index
    %390 = vector.load %arg4[%c456, %c0_134] : memref<464x96xf32, #tpu.memory_space<vmem>>, vector<1x8xf32>
    %391 = vector.broadcast %390 : vector<1x8xf32> to vector<8x8xf32>
    %392 = arith.addf %389, %391 : vector<8x8xf32>
    %c0_135 = arith.constant 0 : index
    %c0_136 = arith.constant 0 : index
    %393 = vector.load %arg5[%c0_135, %c0_136] : memref<8x8xf32, #tpu.memory_space<vmem>>, vector<8x8xf32>
    tpu.vector_store %arg5[%c0_135, %c0_136], %392 {strides = array<i32>} : memref<8x8xf32, #tpu.memory_space<vmem>>, vector<8x8xf32>,
    return
  }
  func.func @transform_0(%arg0: i32) -> (i32, i32) {
    %c0_i32 = arith.constant 0 : i32
    %c0_i32_0 = arith.constant 0 : i32
    return %arg0, %c0_i32 : i32, i32
  }
  func.func @transform_1(%arg0: i32) -> (i32, i32) {
    %c0_i32 = arith.constant 0 : i32
    %c0_i32_0 = arith.constant 0 : i32
    return %arg0, %c0_i32 : i32, i32
  }
  func.func @transform_2(%arg0: i32) -> (i32, i32) {
    %c0_i32 = arith.constant 0 : i32
    %c0_i32_0 = arith.constant 0 : i32
    return %arg0, %c0_i32 : i32, i32
  }
  func.func @transform_3(%arg0: i32) -> (i32, i32) {
    %c0_i32 = arith.constant 0 : i32
    %c0_i32_0 = arith.constant 0 : i32
    %c0_i32_1 = arith.constant 0 : i32
    return %c0_i32, %c0_i32_0 : i32, i32
  }
  func.func @transform_4(%arg0: i32) -> (i32, i32) {
    %c0_i32 = arith.constant 0 : i32
    %c0_i32_0 = arith.constant 0 : i32
    return %arg0, %c0_i32 : i32, i32
  }
}

</mosaic_0001>

<bundles_post_ra>
// kernel: actor_forward.1
= control target key start
LH: loop header
LB: loop body
LE: loop exit
PB: predicated region body
PF: predicated region fallthrough
CT: control target
= control target key end

     0   :  { %9 = vsyncpa [#allocation3], 0  ;;  %s6899_s0 = inlined_call_operand.vmem [shape: f32[16,16], index: 0, kind: input, shape index: {}]   ;;  %s6900_s1 = inlined_call_operand.vmem [shape: f32[16,32], index: 1, kind: input, shape index: {}]   ;;  %s6901_s2 = inlined_call_operand.vmem [shape: f32[16,32], index: 2, kind: input, shape index: {}]   ;;  %s6902_s3 = inlined_call_operand.vmem [shape: f32[464,96], index: 3, kind: input, shape index: {}]   ;;  %s6903_s4 = inlined_call_operand.hbm [shape: f32[16,8], index: 4, kind: output, shape index: {}]  }
   0x1   :  { %11 = vsyncpa [#allocation3 + $0x1], 0  ;;  %s6171_s15 = smov 0   ;;  %s6173_s16 = smov 0  }
   0x2   :  { %s6175_s17 = smov 0   ;;  %s6177_s18 = smov 0  }
   0x3 LB: > { %s6192_s19 = sadd.s32 4294967295, %s6128_s18   ;;  %s5078_s20 = sadd.s32 4294967294, %s6128_s18   ;;  %s6128_s18 = sphi %s6177_s18, %s6913_s18   ;;  %s6124_s17 = sphi %s6175_s17, %s6912_s17   ;;  %s6120_s16 = sphi %s6173_s16, %s6911_s16   ;;  %s6116_s15 = sphi %s6171_s15, %s6910_s15  }
   0x4   : > { %s6196_s21 = sadd.s32 1, %s6128_s18   ;;  %s123_s22 = sadd.s32 1, %s6124_s17 }
   0x5   : > { %s120_s23 = ssub.s32 %s6128_s18, %s6196_s21  ;;  %p133_p0 = scmp.ne.s32.totalorder %s6124_s17, %s6120_s16 }
   0x6   : > { %p121_p1 = scmp.eq.s32.totalorder %s120_s23, 0  ;;  %p134_p2 = scmp.eq.s32.totalorder %s6192_s19, 1 }
   0x7   : > { %p139_p3 = scmp.ne.s32.totalorder %s6120_s16, %s6116_s15  ;;  %p140_p4 = scmp.eq.s32.totalorder %s5078_s20, 1 }
   0x8   : > { %s6207_s24 = scalar_select %p121_p1, %s6124_s17, %s123_s22  }
   0x9   : > { %p6209_p5 = por %p134_p2, %p133_p0  ;;  %p6213_p6 = por %p140_p4, %p139_p3 }
   0xa   : > { %p5081_p7 = scmp.ge.s32.totalorder %s6128_s18, 1  ;;  %p182_p8 = scmp.lt.s32.totalorder %s6128_s18, 3 }
   0xc   : > { %p183_p9 = pnand %p5081_p7, %p182_p8 }
   0xd   : > { %v228_v0 = vld [vmem:[%s6902_s3 + $0x28] sm:$0xff] (!%p183_p9)  ;;  %v229_v1 = vld [vmem:[%s6902_s3 + $0x30] sm:$0xff] (!%p183_p9)  ;;  %v6130_v3 = vmov (!%p183_p9), 0.0|0.0   ;;  %v230_v6 = vld [vmem:[%s6902_s3 + $0x38] sm:$0xff] (!%p183_p9)  ;;  %p215_p10 = scmp.lt.s32.totalorder (!%p183_p9), %s6192_s19, 1  ;;  %vm6131_vm0 = vmmov (!%p183_p9), 0  }
   0xe   : > { %186 = sbr.rel (%p183_p9) target bundleno = 9370 (0x249a), region = 36  ;;  %v312_v2 = vld [vmem:[%s6902_s3 + $0xc8] sm:$0xff] (!%p183_p9)  ;;  %5722 = vmatprep.subr.bf16.mxu0 (!%p183_p9), %v6130_v3  ;;  %v5723_v4 = vpack.c.bf16 (!%p183_p9), %v229_v1, %v228_v0  ;;  %5728 = vmatprep.subr.bf16.mxu1 (!%p183_p9), %v6130_v3  ;;  %v313_v5 = vld [vmem:[%s6902_s3 + $0xd0] sm:$0xff] (!%p183_p9)  ;;  %v231_v7 = vld [vmem:[%s6902_s3 + $0x40] sm:$0xff] (!%p183_p9)  ;;  %v6132_v9 = vmov (!%p183_p9), 0.0   ;;  %vm319_vm1 = vcmask (!%p183_p9), 130048  }
   0xf   : > { %v5729_v8 = vpack.c.bf16 (!%p183_p9), %v313_v5, %v312_v2  ;;  %5381 = vmatprep.mubr.msk.f32.mxu1 (!%p183_p9), %vm6131_vm0, %v6132_v9  ;;  %5374 = vmatprep.mubr.msk.f32.mxu0 (!%p183_p9), %vm6131_vm0, %v6132_v9  ;;  %v5726_v10 = vpack.c.bf16 (!%p183_p9), %v231_v7, %v230_v6  ;;  %v394_v11 = vld [vmem:[%s6902_s3 + $0xe0] sm:$0xff] (!%p183_p9)  ;;  %v395_v12 = vld [vmem:[%s6902_s3 + $0xe8] sm:$0xff] (!%p183_p9)  ;;  %v396_v16 = vld [vmem:[%s6902_s3 + $0xf0] sm:$0xff] (!%p183_p9)  ;;  %vm237_vm2 = vcmask (!%p183_p9), 261120   ;;  %vm590_vm3 = vcmask (!%p183_p9), 64512   ;;  %s6135_s12 = smov (!%p183_p9), 88  }
  0x10   : > { %5724 = vmatpush3.bf16.msra.mxu0 (!%p183_p9), %v5723_v4  ;;  %v477_v13 = vld [vmem:[%s6902_s3] sm:$0xff] (!%p183_p9)  ;;  %v478_v14 = vld [vmem:[%s6902_s3 + $0x8] sm:$0xff] (!%p183_p9)  ;;  %v5732_v15 = vpack.c.bf16 (!%p183_p9), %v395_v12, %v394_v11  ;;  %v397_v17 = vld [vmem:[%s6902_s3 + $0xf8] sm:$0xff] (!%p183_p9)  ;;  %vm668_vm4 = vcmask (!%p183_p9), 57344   ;;  %s6136_s14 = smov (!%p183_p9), 112   ;;  %s6137_s27 = smov (!%p183_p9), 80  }
  0x11   : > { %5725 = vmatprep.subr.bf16.mxu0 (!%p183_p9), %v6130_v3  ;;  %5730 = vmatpush3.bf16.msra.mxu1 (!%p183_p9), %v5729_v8  ;;  %v5738_v20 = vpack.c.bf16 (!%p183_p9), %v478_v14, %v477_v13  ;;  %v479_v21 = vld [vmem:[%s6902_s3 + $0x10] sm:$0xff] (!%p183_p9)  ;;  %v480_v22 = vld [vmem:[%s6902_s3 + $0x18] sm:$0xff] (!%p183_p9)  ;;  %v5735_v23 = vpack.c.bf16 (!%p183_p9), %v397_v17, %v396_v16  ;;  %v5086_v28 = vld [vmem:[%s6902_s3 + $0x48] ss:$0 sm:$0xff] (!%p183_p9)  ;;  %s6138_s28 = smov (!%p183_p9), 104   ;;  %s6139_s6 = smov (!%p183_p9), 72  }
  0x12   : > { %5731 = vmatprep.subr.bf16.mxu1 (!%p183_p9), %v6130_v3  ;;  %v5741_v24 = vpack.c.bf16 (!%p183_p9), %v480_v22, %v479_v21  ;;  %v5088_v26 = vld [vmem:[%s6902_s3 + $0xd8] ss:$0 sm:$0xff] (!%p183_p9)  ;;  %v481_v35 = vld [vmem:[%s6902_s3 + $0x20] sm:$0x1] (!%p183_p9)  ;;  %v482_v7 = vld [vmem:[%s6902_s3 + $0x50] sm:$0xff] (!%p183_p9)  ;;  %vm1730_vm6 = vcmask (!%p183_p9), 65536  }
  0x13   : > { %v483_v1 = vld [vmem:[%s6902_s3 + $0x58] sm:$0xff] (!%p183_p9)  ;;  %vm6450_vm5 = vmpackc.low (!%p183_p9), %vm590_vm3, %vm590_vm3  ;;  %vm1726_vm7 = vcmask (!%p183_p9), 72704   ;;  %s6141_s30 = smov (!%p183_p9), 64   ;;  %s6142_s7 = smov (!%p183_p9), 48   ;;  %vm1761_vm8 = vcmask (!%p183_p9), 1040384   ;;  %vm6144_vm9 = vmmov (!%p183_p9), 1  }
  0x14   : > { %5727 = vmatpush3.bf16.msra.mxu0 (!%p183_p9), %v5726_v10  ;;  %vm6519_vm10 = vmpackc.low (!%p183_p9), %vm1761_vm8, %vm6144_vm9 }
  0x15   : > { %s216_s13 = scalar_select %p215_p10, %s6192_s19, 1  ;;  %5737 = vmatprep.subr.bf16.mxu0 %v6130_v3 }
  0x17   : > { %s6258_s5 = sshll.u32 %s216_s13, 3 }
  0x18   : > { %s218_s8 = scalar_lea.vmem %s6899_s0, %s6258_s5  ;;  %s226_s11 = scalar_lea.vmem %s6901_s2, %s6258_s5 }
  0x19   : > { %v311_v18 = vld [vmem:[%s218_s8] sm:$0xff]  ;;  %s6133_s8 = smov 120   ;;  %s222_s13 = scalar_lea.vmem %s6900_s1, %s6258_s5 }
  0x1a   : > { %v227_v19 = vld [vmem:[%s226_s11] sm:$0xff]  ;;  %5382 = vmatmul.mubr.msk.f32.vlgmr.msra.gmra.mrb[0].mxu1 %vm319_vm1, %v311_v18  ;;  %s6134_s11 = smov 96   ;;  %s6140_s5 = smov 56  }
  0x1b   : > { %5733 = vmatpush3.bf16.msra.mxu1 %v5732_v15  ;;  %5392 = vmatprep.mubr.msk.f32.mxu1 %vm6131_vm0, %v6132_v9  ;;  %v517_v25 = vrot.slane %v227_v19, 7 }
  0x1c   : > { %5375 = vmatmul.mubr.msk.f32.vlgmr.msra.gmra.mrb[0].mxu0 %vm237_vm2, %v227_v19  ;;  %5734 = vmatprep.subr.bf16.mxu1 %v6130_v3 }
  0x1d   : > { %5739 = vmatpush3.bf16.msra.mxu0 %v5738_v20  ;;  %5403 = vmatprep.mubr.msk.f32.mxu0 %vm6131_vm0, %v6132_v9 }
  0x1e   : > { %5740 = vmatprep.subr.bf16.mxu0 %v6130_v3 }
  0x1f   : > { %5736 = vmatpush3.bf16.msra.mxu1 %v5735_v23 }
  0x20   : > { %5406 = vmatprep.subr.mxu1 %v6132_v9 }
  0x21   : > { %5742 = vmatpush3.bf16.msra.mxu0 %v5741_v24 }
  0x22   : > { %5411 = vmatprep.subr.mxu0 %v6132_v9 }
  0x24   : > { %5404 = vmatmul.mubr.msk.f32.vlgmr.msra.gmra.mrb[2].mxu0 %vm237_vm2, %v517_v25 }
  0x25   : > { %5413 = vmatprep.mubr.msk.f32.mxu0 %vm6131_vm0, %v6132_v9 }
  0xed   : > { %v389_v27 = vpop.f32.mrb[0].mxu1 }
  0xee   : > { %v390_v29 = vadd.f32 %v5088_v26, %v389_v27  ;;  %v5383_v30 = vpop.f32.mrb[1].mxu1 }
  0xef   : > { %v307_v31 = vpop.f32.mrb[0].mxu0 }
  0xf0   : > { %v393_v32 = vmax.f32 %v390_v29, 0.0  ;;  %v6300_v33 = vadd.f32 %v5086_v28, %v307_v31  ;;  %v5376_v34 = vpop.f32.mrb[1].mxu0 }
  0xf2   : > { %758 = vrot.lane.b32.xlu0 %v6300_v33, %s6133_s8  ;;  %5393 = vmatmul.mubr.msk.f32.vlgmr.msra.gmra.mrb[2].mxu1 %vm237_vm2, %v393_v32 }
  0xf3   : > { %5407 = vmatpush3.xpose.msk.msra.mxu1 %vm590_vm3, %v6300_v33  ;;  %5408 = vmatprep.mubr.msk.f32.mxu1 %vm6131_vm0, %v6132_v9 }
  0xf4   : > { %5416 = vmatprep.subr.mxu1 %v6132_v9 }
  0xf7   : > { %v586_v36 = vpop.f32.mrb[2].mxu0 }
  0xf8   : > { %v6313_v37 = vadd.f32 %v586_v36, %v481_v35  ;;  %v5405_v38 = vpop.f32.mrb[3].mxu0  ;;  %v484_v36 = vld [vmem:[%s6902_s3 + $0x60] sm:$0xff] }
  0xfa   : > { %756 = vrot.lane.b32.xlu0 %v6313_v37, %s6133_s8  ;;  %5409 = vmatmul.mubr.msk.f32.vlgmr.msra.gmra.mrb[4].mxu1 %vm590_vm3, %v6313_v37 }
  0xfb   : > { %5418 = vmatprep.mubr.msk.f32.mxu1 %vm6131_vm0, %v6132_v9 }
 0x164   : > { %v759_v39 = vpop.permute.xlu0 %758 }
 0x165   : > { %5417 = vmatpush3.xpose.msk.msra.mxu1 %vm590_vm3, %v759_v39 }
 0x166   : > { %5426 = vmatprep.subr.mxu1 %v6132_v9 }
 0x16c   : > { %v757_v40 = vpop.permute.xlu0 %756 }
 0x16d   : > { %5419 = vmatmul.mubr.msk.f32.vlgmr.msra.gmra.mrb[6].mxu1 %vm590_vm3, %v757_v40 }
 0x16e   : > { %5428 = vmatprep.mubr.msk.f32.mxu1 %vm6131_vm0, %v6132_v9  ;;  %5427 = vmatpush3.msra.mxu1 %v483_v1  ;;  %v486_v1 = vld [vmem:[%s6902_s3 + $0x70] sm:$0x1] }
 0x16f   : > { %5436 = vmatprep.subr.mxu1 %v6132_v9 }
 0x1c5   : > { %v6326_v41 = vpop.f32.mrb[2].mxu1 }
 0x1c6   : > { %v5394_v42 = vpop.f32.mrb[3].mxu1 }
 0x1cd   : > { %v663_v43 = vpop.f32.mrb[4].mxu1 }
 0x1ce   : > { %v667_v44 = vmul.f32 0.35355338, %v663_v43  ;;  %v5410_v45 = vpop.f32.mrb[5].mxu1 }
 0x1d0   : > { %v669_v46 = vsel %vm668_vm4, %v667_v44, -inf }
 0x1d1   : > { %670 = vmax.xlane.f32.xlu1 %v669_v46 }
 0x240   : > { %v830_v47 = vpop.f32.mrb[6].mxu1 }
 0x241   : > { %v834_v48 = vmul.f32 0.35355338, %v830_v47  ;;  %v5420_v49 = vpop.f32.mrb[7].mxu1 }
 0x242   : > { %v485_v49 = vld [vmem:[%s6902_s3 + $0x68] sm:$0xff] }
 0x243   : > { %v835_v50 = vsel %vm668_vm4, %v834_v48, -inf }
 0x244   : > { %836 = vmax.xlane.f32.xlu1 %v835_v50 }
 0x255   : > { %680 = vrot.lane.b32.xlu1 %v6300_v33, %s6134_s11 }
 0x25e   : > { %v671_v51 = vpop.xlane.xlu1 %670 }
 0x25f   : > { %v672_v52 = vsub.f32 %v667_v44, %v671_v51 }
 0x261   : > { %v673_v53 = vmul.f32 1.442695, %v672_v52 }
 0x263   : > { %5986 = vpow2.f32 %v673_v53 }
 0x26d   : > { %v5987_v54 = vpop.eup %5986 }
 0x26e   : > { %v675_v55 = vsel %vm668_vm4, %v5987_v54, 0.0 }
 0x26f   : > { %676 = vadd.xlane.f32.xlu0 %v675_v55 }
 0x2d1   : > { %v837_v56 = vpop.xlane.xlu1 %836 }
 0x2d2   : > { %v838_v57 = vsub.f32 %v834_v48, %v837_v56 }
 0x2d4   : > { %v839_v58 = vmul.f32 1.442695, %v838_v57  ;;  %v488_v57 = vld [vmem:[%s6902_s3 + $0x80] sm:$0xff] }
 0x2d5   : > { %v681_v59 = vpop.permute.xlu1 %680 }
 0x2d6   : > { %5988 = vpow2.f32 %v839_v58  ;;  %5412 = vmatpush3.msra.mxu0 %v681_v59 }
 0x2d7   : > { %5421 = vmatprep.subr.mxu0 %v6132_v9 }
 0x2e0   : > { %v5989_v60 = vpop.eup %5988 }
 0x2e1   : > { %v841_v61 = vsel %vm668_vm4, %v5989_v60, 0.0 }
 0x2e2   : > { %842 = vadd.xlane.f32.xlu1 %v841_v61  ;;  %v489_v61 = vld [vmem:[%s6902_s3 + $0x88] sm:$0xff] }
 0x2f3   : > { %846 = vrot.lane.b32.xlu1 %v6300_v33, %s6135_s12 }
 0x2f7   : > { %1070 = vrot.lane.b32.xlu1 %v6300_v33, %s6136_s14 }
 0x2fb   : > { %1068 = vrot.lane.b32.xlu1 %v6313_v37, %s6136_s14 }
 0x2fc   : > { %v677_v62 = vpop.xlane.xlu0 %676 }
 0x2fd   : > { %5990 = vrcp.f32 %v677_v62  ;;  %v490_v62 = vld [vmem:[%s6902_s3 + $0x90] sm:$0xff] }
 0x307   : > { %v5991_v63 = vpop.eup %5990 }
 0x308   : > { %v679_v0 = vmul.f32 %v5991_v63, %v5987_v54  ;;  %v5747_v63 = vpack.c.bf16 %v490_v62, %v489_v61 }
 0x30a   : > { %5414 = vmatmul.mubr.msk.f32.vlgmr.msra.gmra.mrb[4].mxu0 %vm590_vm3, %v679_v0  ;;  %v476_v0 = vld [vmem:[%s222_s13] sm:$0xff]  ;;  %s6143_s13 = smov 40  }
 0x30b   : > { %5423 = vmatprep.mubr.msk.f32.mxu0 %vm6131_vm0, %v6132_v9 }
 0x36f   : > { %v843_v2 = vpop.xlane.xlu1 %842 }
 0x370   : > { %5992 = vrcp.f32 %v843_v2 }
 0x373   : > { %v847_v4 = vpop.permute.xlu1 %846 }
 0x374   : > { %5422 = vmatpush3.msra.mxu0 %v847_v4 }
 0x375   : > { %5431 = vmatprep.subr.mxu0 %v6132_v9 }
 0x377   : > { %v1071_v11 = vpop.permute.xlu1 %1070 }
 0x37a   : > { %v5993_v5 = vpop.eup %5992 }
 0x37b   : > { %v845_v6 = vmul.f32 %v5993_v5, %v5989_v60  ;;  %v1069_v14 = vpop.permute.xlu1 %1068 }
 0x37d   : > { %5424 = vmatmul.mubr.msk.f32.vlgmr.msra.gmra.mrb[6].mxu0 %vm590_vm3, %v845_v6 }
 0x37e   : > { %5432 = vmatpush3.msra.mxu0 %v482_v7  ;;  %5433 = vmatprep.mubr.msk.f32.mxu0 %vm6131_vm0, %v6132_v9 }
 0x37f   : > { %5441 = vmatprep.subr.mxu0 %v6132_v9 }
 0x3dd   : > { %v752_v8 = vpop.f32.mrb[4].mxu0 }
 0x3de   : > { %v5415_v10 = vpop.f32.mrb[5].mxu0  ;;  %5434 = vmatmul.mubr.msk.f32.vlgmr.msra.gmra.mrb[8].mxu0 %vm590_vm3, %v752_v8  ;;  %v5109_v8 = vld [vmem:[%s6902_s3 + $0x98] ss:$0 sm:$0xff] }
 0x3df   : > { %5443 = vmatprep.mubr.msk.f32.mxu0 %vm6131_vm0, %v6132_v9 }
 0x450   : > { %v918_v12 = vpop.f32.mrb[6].mxu0 }
 0x451   : > { %v5425_v13 = vpop.f32.mrb[7].mxu0  ;;  %5429 = vmatmul.mubr.msk.f32.vlgmr.msra.gmra.mrb[8].mxu1 %vm590_vm3, %v918_v12 }
 0x452   : > { %5437 = vmatpush3.xpose.msk.msra.mxu1 %vm590_vm3, %v1071_v11  ;;  %5438 = vmatprep.mubr.msk.f32.mxu1 %vm6131_vm0, %v6132_v9 }
 0x453   : > { %5446 = vmatprep.subr.mxu1 %v6132_v9 }
 0x455   : > { %5439 = vmatmul.mubr.msk.f32.vlgmr.msra.gmra.mrb[10].mxu1 %vm590_vm3, %v1069_v14 }
 0x456   : > { %5448 = vmatprep.mubr.msk.f32.mxu1 %vm6131_vm0, %v6132_v9  ;;  %5447 = vmatpush3.msra.mxu1 %v484_v36 }
 0x457   : > { %5456 = vmatprep.subr.mxu1 %v6132_v9 }
 0x4b1   : > { %v1064_v15 = vpop.f32.mrb[8].mxu0 }
 0x4b2   : > { %v5435_v16 = vpop.f32.mrb[9].mxu0 }
 0x524   : > { %v991_v17 = vpop.f32.mrb[8].mxu1 }
 0x525   : > { %v1065_v18 = vadd.f32 %v1064_v15, %v991_v17  ;;  %v5430_v19 = vpop.f32.mrb[9].mxu1 }
 0x528   : > { %v1142_v20 = vpop.f32.mrb[10].mxu1 }
 0x529   : > { %v1146_v21 = vmul.f32 0.35355338, %v1142_v20  ;;  %v5440_v22 = vpop.f32.mrb[11].mxu1 }
 0x52b   : > { %v1147_v23 = vsel %vm668_vm4, %v1146_v21, -inf }
 0x52c   : > { %1148 = vmax.xlane.f32.xlu0 %v1147_v23 }
 0x542   : > { %1158 = vrot.lane.b32.xlu0 %v6300_v33, %s6137_s27 }
 0x546   : > { %1310 = vrot.lane.b32.xlu0 %v6300_v33, %s6138_s28 }
 0x54a   : > { %1308 = vrot.lane.b32.xlu0 %v6313_v37, %s6138_s28 }
 0x5b9   : > { %v1149_v24 = vpop.xlane.xlu0 %1148 }
 0x5ba   : > { %v1150_v25 = vsub.f32 %v1146_v21, %v1149_v24 }
 0x5bc   : > { %v1151_v26 = vmul.f32 1.442695, %v1150_v25 }
 0x5bd   : > { %v1159_v27 = vpop.permute.xlu0 %1158 }
 0x5be   : > { %5994 = vpow2.f32 %v1151_v26  ;;  %5442 = vmatpush3.msra.mxu0 %v1159_v27 }
 0x5bf   : > { %5451 = vmatprep.subr.mxu0 %v6132_v9 }
 0x5c1   : > { %v1311_v32 = vpop.permute.xlu0 %1310 }
 0x5c5   : > { %v1309_v35 = vpop.permute.xlu0 %1308 }
 0x5c8   : > { %v5995_v28 = vpop.eup %5994 }
 0x5c9   : > { %v1153_v29 = vsel %vm668_vm4, %v5995_v28, 0.0 }
 0x5ca   : > { %1154 = vadd.xlane.f32.xlu1 %v1153_v29 }
 0x657   : > { %v1155_v30 = vpop.xlane.xlu1 %1154 }
 0x658   : > { %5996 = vrcp.f32 %v1155_v30 }
 0x662   : > { %v5997_v31 = vpop.eup %5996 }
 0x663   : > { %v1157_v34 = vmul.f32 %v5997_v31, %v5995_v28 }
 0x665   : > { %5444 = vmatmul.mubr.msk.f32.vlgmr.msra.gmra.mrb[10].mxu0 %vm590_vm3, %v1157_v34 }
 0x666   : > { %5452 = vmatpush3.xpose.msk.msra.mxu0 %vm590_vm3, %v1311_v32  ;;  %5453 = vmatprep.mubr.msk.f32.mxu0 %vm6131_vm0, %v6132_v9 }
 0x667   : > { %5461 = vmatprep.subr.mxu0 %v6132_v9 }
 0x669   : > { %5454 = vmatmul.mubr.msk.f32.vlgmr.msra.gmra.mrb[12].mxu0 %vm590_vm3, %v1309_v35 }
 0x66a   : > { %5463 = vmatprep.mubr.msk.f32.mxu0 %vm6131_vm0, %v6132_v9  ;;  %5462 = vmatpush3.msra.mxu0 %v485_v49 }
 0x738   : > { %v1230_v37 = vpop.f32.mrb[10].mxu0 }
 0x739   : > { %v5445_v38 = vpop.f32.mrb[11].mxu0  ;;  %5449 = vmatmul.mubr.msk.f32.vlgmr.msra.gmra.mrb[12].mxu1 %vm590_vm3, %v1230_v37 }
 0x73a   : > { %5458 = vmatprep.mubr.msk.f32.mxu1 %vm6131_vm0, %v6132_v9 }
 0x73c   : > { %v1382_v39 = vpop.f32.mrb[12].mxu0 }
 0x73d   : > { %v1386_v40 = vmul.f32 0.35355338, %v1382_v39  ;;  %v5455_v42 = vpop.f32.mrb[13].mxu0 }
 0x73f   : > { %v1387_v43 = vsel %vm668_vm4, %v1386_v40, -inf }
 0x740   : > { %1388 = vmax.xlane.f32.xlu0 %v1387_v43 }
 0x7cd   : > { %v1389_v44 = vpop.xlane.xlu0 %1388 }
 0x7ce   : > { %v1390_v45 = vsub.f32 %v1386_v40, %v1389_v44 }
 0x7d0   : > { %v1391_v46 = vmul.f32 1.442695, %v1390_v45 }
 0x7d2   : > { %5998 = vpow2.f32 %v1391_v46 }
 0x7dc   : > { %v5999_v47 = vpop.eup %5998 }
 0x7dd   : > { %v1393_v48 = vsel %vm668_vm4, %v5999_v47, 0.0 }
 0x7de   : > { %1394 = vadd.xlane.f32.xlu1 %v1393_v48 }
 0x7ef   : > { %1398 = vrot.lane.b32.xlu1 %v6300_v33, %s6139_s6  ;;  %v487_v33 = vld [vmem:[%s6902_s3 + $0x78] sm:$0xff] }
 0x7f0   : > { %v5743_v58 = vpack.c.bf16 %v488_v57, %v487_v33 }
 0x80c   : > { %v1303_v50 = vpop.f32.mrb[12].mxu1 }
 0x80d   : > { %v1307_v51 = vadd.f32 %v1303_v50, %v1065_v18  ;;  %v5450_v52 = vpop.f32.mrb[13].mxu1 }
 0x86b   : > { %v1395_v53 = vpop.xlane.xlu1 %1394 }
 0x86c   : > { %6000 = vrcp.f32 %v1395_v53 }
 0x86f   : > { %v1399_v54 = vpop.permute.xlu1 %1398 }
 0x870   : > { %5457 = vmatpush3.msra.mxu1 %v1399_v54 }
 0x871   : > { %5744 = vmatprep.subr.bf16.mxu1 %v5743_v58 }
 0x876   : > { %v6001_v55 = vpop.eup %6000 }
 0x877   : > { %v1397_v56 = vmul.f32 %v6001_v55, %v5999_v47 }
 0x879   : > { %5459 = vmatmul.mubr.msk.f32.vlgmr.msra.gmra.mrb[14].mxu1 %vm590_vm3, %v1397_v56 }
 0x87a   : > { %5746 = vmatpush3.bf16.msra.mxu1 %v5743_v58  ;;  %5474 = vmatprep.mubr.msk.f32.mxu1 %vm237_vm2, %v476_v0 }
 0x87b   : > { %5748 = vmatprep.subr.bf16.mxu1 %v5747_v63 }
 0x87e   : > { %5750 = vmatpush3.bf16.msra.mxu1 %v5747_v63 }
 0x94c   : > { %v1470_v59 = vpop.f32.mrb[14].mxu1 }
 0x94d   : > { %v5460_v60 = vpop.f32.mrb[15].mxu1  ;;  %5464 = vmatmul.mubr.msk.f32.vlgmr.msra.gmra.mrb[14].mxu0 %vm590_vm3, %v1470_v59 }
 0xa20   : > { %v1543_v2 = vpop.f32.mrb[14].mxu0 }
 0xa21   : > { %v1547_v4 = vadd.f32 %v1543_v2, %v1307_v51  ;;  %v5465_v5 = vpop.f32.mrb[15].mxu0 }
 0xa23   : > { %v1548_v6 = vadd.f32 %v1547_v4, %v486_v1 }
 0xa25   : > { %v1549_v7 = vmax.f32 %v1548_v6, 0.0 }
 0xa27   : > { %5475 = vmatmul.mubr.msk.f32.vlgmr.msra.gmra.mrb[16].mxu1 %vm237_vm2, %v1549_v7 }
 0xafa   : > { %v5476_v10 = vpop.f32.mrb[16].mxu1 }
 0xafb   : > { %v6424_v11 = vadd.f32 %v5476_v10, %v5109_v8  ;;  %v1626_v12 = vpop.f32.mrb[17].mxu1 }
 0xafc   : > { %v6426_v13 = vadd.f32 %v5109_v8, %v1626_v12  ;;  %v5090_v8 = vld [vmem:[%s6902_s3 + $0x100] ss:$0 sm:$0xff] }
 0xafd   : > { %v6512_v10 = vadd.f32 %v5090_v8, %v6326_v41 }
 0xafe   : > { %1839 = vrot.lane.b32.xlu0 %v6426_v13, %s6133_s8  ;;  %5481 = vmatprep.mubr.msk.f32.mxu0 %vm590_vm3, %v6426_v13  ;;  %v6434_v14 = vpack.i.bf16 %v6424_v11, %v6426_v13 }
 0xb00   : > { %5912 = vrot.lane.b32.xlu1 %v6434_v14, %s6134_s11 }
 0xb04   : > { %5917 = vrot.lane.b32.xlu1 %v6434_v14, %s6135_s12 }
 0xb08   : > { %1841 = vrot.lane.b32.xlu1 %v6424_v11, %s6133_s8 }
 0xb0c   : > { %5922 = vrot.lane.b32.xlu1 %v6434_v14, %s6137_s27 }
 0xb10   : > { %2204 = vrot.lane.b32.xlu1 %v6426_v13, %s6136_s14 }
 0xb14   : > { %2206 = vrot.lane.b32.xlu1 %v6424_v11, %s6136_s14 }
 0xb70   : > { %v1840_v26 = vpop.permute.xlu0 %1839 }
 0xb72   : > { %v5913_v15 = vpop.permute.xlu1 %5912 }
 0xb73   : > { %v5915_v16 = vunpack.i.h.bf16 %v5913_v15  ;;  %v5914_v17 = vunpack.i.l.bf16 %v5913_v15 }
 0xb75   : > { %v5751_v19 = vpack.c.bf16 %v5915_v16, %v5914_v17 }
 0xb76   : > { %v5918_v20 = vpop.permute.xlu1 %5917 }
 0xb77   : > { %v5920_v21 = vunpack.i.h.bf16 %v5918_v20  ;;  %v5919_v22 = vunpack.i.l.bf16 %v5918_v20  ;;  %5753 = vmatprep.subr.msk.bf16.mxu0 %vm6450_vm5, %v5751_v19 }
 0xb78   : > { %5756 = vmatpush3.bf16.xpose.msk.msra.mxu0 %vm6450_vm5, %v5751_v19 }
 0xb79   : > { %v5763_v23 = vpack.c.bf16 %v5920_v21, %v5919_v22 }
 0xb7a   : > { %v1842_v24 = vpop.permute.xlu1 %1841 }
 0xb7b   : > { %5765 = vmatprep.subr.msk.bf16.mxu0 %vm6450_vm5, %v5763_v23 }
 0xb7e   : > { %v5923_v25 = vpop.permute.xlu1 %5922 }
 0xb7f   : > { %v5925_v27 = vunpack.i.h.bf16 %v5923_v25  ;;  %v5924_v28 = vunpack.i.l.bf16 %v5923_v25  ;;  %5482 = vmatmul.mubr.msk.f32.vlgmr.msra.gmra.mrb[16].mxu0 %vm590_vm3, %v6424_v11 }
 0xb80   : > { %5768 = vmatpush3.bf16.xpose.msk.msra.mxu0 %vm6450_vm5, %v5763_v23  ;;  %5495 = vmatprep.mubr.msk.f32.mxu0 %vm590_vm3, %v1840_v26  ;;  %v4898_v23 = vld [vmem:[%s6902_s3 + $0x1a8] sm:$0xff] }
 0xb81   : > { %v5775_v29 = vpack.c.bf16 %v5925_v27, %v5924_v28 }
 0xb82   : > { %v2205_v30 = vpop.permute.xlu1 %2204 }
 0xb83   : > { %5777 = vmatprep.subr.msk.bf16.mxu0 %vm6450_vm5, %v5775_v29 }
 0xb86   : > { %v2207_v31 = vpop.permute.xlu1 %2206 }
 0xb87   : > { %5496 = vmatmul.mubr.msk.f32.vlgmr.msra.gmra.mrb[18].mxu0 %vm590_vm3, %v1842_v24 }
 0xb88   : > { %5780 = vmatpush3.bf16.xpose.msk.msra.mxu0 %vm6450_vm5, %v5775_v29  ;;  %5519 = vmatprep.mubr.msk.f32.mxu0 %vm590_vm3, %v2205_v30 }
 0xb8f   : > { %5520 = vmatmul.mubr.msk.f32.vlgmr.msra.gmra.mrb[20].mxu0 %vm590_vm3, %v2207_v31 }
 0xc52   : > { %v5483_v32 = vpop.f32.mrb[16].mxu0 }
 0xc53   : > { %v1725_v34 = vmul.f32 0.35355338, %v5483_v32  ;;  %v1715_v35 = vpop.f32.mrb[17].mxu0 }
 0xc54   : > { %v1724_v36 = vmul.f32 0.35355338, %v1715_v35 }
 0xc55   : > { %v1731_v37 = vsel %vm1730_vm6, %v1725_v34, -inf }
 0xc56   : > { %1732 = vmax.xlane.f32.xlu0 %v1731_v37  ;;  %v1727_v38 = vsel %vm1726_vm7, %v1724_v36, -inf }
 0xc57   : > { %1728 = vmax.xlane.f32.xlu1 %v1727_v38 }
 0xc5a   : > { %v5497_v39 = vpop.f32.mrb[18].mxu0 }
 0xc5b   : > { %v1931_v40 = vmul.f32 0.35355338, %v5497_v39  ;;  %v1921_v42 = vpop.f32.mrb[19].mxu0 }
 0xc5c   : > { %v1930_v43 = vmul.f32 0.35355338, %v1921_v42 }
 0xc5d   : > { %v1935_v44 = vsel %vm1730_vm6, %v1931_v40, -inf }
 0xc5e   : > { %1936 = vmax.xlane.f32.xlu1 %v1935_v44  ;;  %v1932_v45 = vsel %vm1726_vm7, %v1930_v43, -inf }
 0xc5f   : > { %1933 = vmax.xlane.f32.xlu0 %v1932_v45 }
 0xc62   : > { %v5521_v46 = vpop.f32.mrb[20].mxu0 }
 0xc63   : > { %v2286_v47 = vpop.f32.mrb[21].mxu0  ;;  %v6498_v5 = vmul.f32 0.35355338, %v5521_v46 }
 0xc64   : > { %v6496_v4 = vmul.f32 0.35355338, %v2286_v47 }
 0xc65   : > { %v2300_v7 = vsel %vm1730_vm6, %v6498_v5, -inf }
 0xc66   : > { %v2297_v6 = vsel %vm1726_vm7, %v6496_v4, -inf }
 0xce3   : > { %v1733_v48 = vpop.xlane.xlu0 %1732 }
 0xce4   : > { %v1735_v49 = vsub.f32 %v1725_v34, %v1733_v48  ;;  %v1729_v50 = vpop.xlane.xlu1 %1728 }
 0xce5   : > { %v1734_v51 = vsub.f32 %v1724_v36, %v1729_v50  ;;  %v493_v50 = vld [vmem:[%s6902_s3 + $0xa8] sm:$0xff] }
 0xce6   : > { %v1738_v52 = vmul.f32 1.442695, %v1735_v49 }
 0xce7   : > { %v1736_v53 = vmul.f32 1.442695, %v1734_v51  ;;  %v492_v51 = vld [vmem:[%s6902_s3 + $0xa0] sm:$0xff] }
 0xce8   : > { %6002 = vpow2.f32 %v1738_v52 }
 0xce9   : > { %6004 = vpow2.f32 %v1736_v53 }
 0xceb   : > { %v1937_v54 = vpop.xlane.xlu1 %1936 }
 0xcec   : > { %v1939_v55 = vsub.f32 %v1931_v40, %v1937_v54  ;;  %v1934_v56 = vpop.xlane.xlu0 %1933 }
 0xced   : > { %v1938_v33 = vsub.f32 %v1930_v43, %v1934_v56 }
 0xcee   : > { %v1942_v57 = vmul.f32 1.442695, %v1939_v55 }
 0xcef   : > { %v1940_v58 = vmul.f32 1.442695, %v1938_v33 }
 0xcf0   : > { %6006 = vpow2.f32 %v1942_v57 }
 0xcf1   : > { %6008 = vpow2.f32 %v1940_v58 }
 0xcf2   : > { %v6476_v59 = vpop.eup %6002 }
 0xcf3   : > { %v6005_v60 = vpop.eup %6004  ;;  %v1743_v61 = vsel %vm1730_vm6, %v6476_v59, 0.0 }
 0xcf4   : > { %1744 = vadd.xlane.f32.xlu1 %v1743_v61  ;;  %v1740_v62 = vsel %vm1726_vm7, %v6005_v60, 0.0 }
 0xcf5   : > { %1741 = vadd.xlane.f32.xlu0 %v1740_v62 }
 0xcfa   : > { %v6481_v63 = vpop.eup %6006 }
 0xcfb   : > { %v6009_v0 = vpop.eup %6008  ;;  %v1947_v1 = vsel %vm1730_vm6, %v6481_v63, 0.0 }
 0xcfc   : > { %1948 = vadd.xlane.f32.xlu1 %v1947_v1  ;;  %v1944_v2 = vsel %vm1726_vm7, %v6009_v0, 0.0 }
 0xcfd   : > { %1945 = vadd.xlane.f32.xlu0 %v1944_v2 }
 0xd0d   : > { %5932 = vrot.lane.b32.xlu1 %v6434_v14, %s6140_s5 }
 0xd11   : > { %5937 = vrot.lane.b32.xlu1 %v6434_v14, %s6139_s6 }
 0xd13   : > { %5927 = vrot.lane.b32.xlu0 %v6434_v14, %s6141_s30 }
 0xd15   : > { %2492 = vrot.lane.b32.xlu1 %v6424_v11, %s6138_s28 }
 0xd17   : > { %2490 = vrot.lane.b32.xlu0 %v6426_v13, %s6138_s28 }
 0xd36   : > { %2298 = vmax.xlane.f32.xlu0 %v2297_v6  ;;  %v494_v6 = vld [vmem:[%s6902_s3 + $0xb0] sm:$0xff] }
 0xd39   : > { %2301 = vmax.xlane.f32.xlu1 %v2300_v7 }
 0xd4a   : > { %5942 = vrot.lane.b32.xlu1 %v6434_v14, %s6142_s7 }
 0xd4e   : > { %5947 = vrot.lane.b32.xlu1 %v6434_v14, %s6143_s13 }
 0xd52   : > { %2949 = vrot.lane.b32.xlu1 %v6512_v10, %s6135_s12 }
 0xd56   : > { %2947 = vrot.lane.b32.xlu1 %v6512_v10, %s6133_s8 }
 0xd81   : > { %v1745_v12 = vpop.xlane.xlu1 %1744 }
 0xd82   : > { %v1742_v11 = vpop.xlane.xlu0 %1741 }
 0xd83   : > { %6010 = vrcp.f32 %v1742_v11 }
 0xd84   : > { %6012 = vrcp.f32 %v1745_v12 }
 0xd89   : > { %v1949_v13 = vpop.xlane.xlu1 %1948 }
 0xd8a   : > { %v1946_v15 = vpop.xlane.xlu0 %1945 }
 0xd8b   : > { %6014 = vrcp.f32 %v1946_v15 }
 0xd8c   : > { %6016 = vrcp.f32 %v1949_v13 }
 0xd8d   : > { %v6011_v16 = vpop.eup %6010  ;;  %v5933_v17 = vpop.permute.xlu1 %5932 }
 0xd8e   : > { %v5928_v14 = vpop.permute.xlu0 %5927  ;;  %v1748_v41 = vmul.f32 %v6011_v16, %v6005_v60  ;;  %v5935_v19 = vunpack.i.h.bf16 %v5933_v17  ;;  %v5934_v20 = vunpack.i.l.bf16 %v5933_v17  ;;  %v6013_v26 = vpop.eup %6012 }
 0xd8f   : > { %v5930_v21 = vunpack.i.h.bf16 %v5928_v14  ;;  %v5929_v22 = vunpack.i.l.bf16 %v5928_v14  ;;  %v1749_v34 = vmul.f32 %v6013_v26, %v6476_v59 }
 0xd90   : > { %5488 = vmatprep.mubr.msk.f32.mxu1 %vm1726_vm7, %v1748_v41  ;;  %v5769_v30 = vpack.c.bf16 %v5935_v19, %v5934_v20 }
 0xd91   : > { %v5757_v24 = vpack.c.bf16 %v5930_v21, %v5929_v22  ;;  %v5938_v25 = vpop.permute.xlu1 %5937 }
 0xd92   : > { %v5940_v27 = vunpack.i.h.bf16 %v5938_v25  ;;  %v5939_v28 = vunpack.i.l.bf16 %v5938_v25  ;;  %v2491_v29 = vpop.permute.xlu0 %2490 }
 0xd93   : > { %5759 = vmatprep.subr.msk.bf16.mxu1 %vm6519_vm10, %v5757_v24  ;;  %5538 = vmatprep.mubr.msk.f32.mxu0 %vm590_vm3, %v2491_v29 }
 0xd94   : > { %v5787_v31 = vpack.c.bf16 %v5940_v27, %v5939_v28  ;;  %5762 = vmatpush3.bf16.msk.msra.mxu1 %vm6519_vm10, %v5757_v24 }
 0xd95   : > { %v6015_v32 = vpop.eup %6014  ;;  %5771 = vmatprep.subr.msk.bf16.mxu1 %vm6519_vm10, %v5769_v30  ;;  %v2493_v38 = vpop.permute.xlu1 %2492 }
 0xd96   : > { %v6017_v35 = vpop.eup %6016  ;;  %5789 = vmatprep.subr.msk.bf16.mxu0 %vm6450_vm5, %v5787_v31  ;;  %v1952_v36 = vmul.f32 %v6015_v32, %v6009_v0 }
 0xd97   : > { %5489 = vmatmul.mubr.msk.f32.vlgmr.msra.gmra.mrb[18].mxu1 %vm1726_vm7, %v1749_v34  ;;  %5792 = vmatpush3.bf16.xpose.msk.msra.mxu0 %vm6450_vm5, %v5787_v31  ;;  %v1953_v37 = vmul.f32 %v6017_v35, %v6481_v63 }
 0xd98   : > { %5774 = vmatpush3.bf16.msk.msra.mxu1 %vm6519_vm10, %v5769_v30  ;;  %5502 = vmatprep.mubr.msk.f32.mxu1 %vm1726_vm7, %v1952_v36  ;;  %v495_v36 = vld [vmem:[%s6902_s3 + $0xb8] sm:$0xff] }
 0xd99   : > { %5553 = vmatprep.subr.mxu0 %v6132_v9  ;;  %5505 = vmatprep.subr.mxu1 %v493_v50 }
 0xd9b   : > { %5503 = vmatmul.mubr.msk.f32.vlgmr.msra.gmra.mrb[20].mxu1 %vm1726_vm7, %v1953_v37 }
 0xd9c   : > { %5506 = vmatpush3.msra.mxu1 %v493_v50 }
 0xd9d   : > { %5510 = vmatprep.subr.mxu1 %v492_v51 }
 0xd9e   : > { %5539 = vmatmul.mubr.msk.f32.vlgmr.msra.gmra.mrb[22].mxu0 %vm590_vm3, %v2493_v38 }
 0xd9f   : > { %5555 = vmatprep.mubr.msk.f32.mxu0 %vm6131_vm0, %v6132_v9 }
 0xdc3   : > { %v2299_v39 = vpop.xlane.xlu0 %2298 }
 0xdc4   : > { %v2303_v40 = vsub.f32 %v6496_v4, %v2299_v39 }
 0xdc6   : > { %v2305_v42 = vmul.f32 1.442695, %v2303_v40  ;;  %v2302_v43 = vpop.xlane.xlu1 %2301 }
 0xdc7   : > { %v2304_v44 = vsub.f32 %v6498_v5, %v2302_v43 }
 0xdc8   : > { %6018 = vpow2.f32 %v2305_v42 }
 0xdc9   : > { %v2307_v45 = vmul.f32 1.442695, %v2304_v44 }
 0xdca   : > { %v5943_v53 = vpop.permute.xlu1 %5942 }
 0xdcb   : > { %6020 = vpow2.f32 %v2307_v45  ;;  %v5945_v33 = vunpack.i.h.bf16 %v5943_v53  ;;  %v5944_v57 = vunpack.i.l.bf16 %v5943_v53 }
 0xdcd   : > { %v5781_v60 = vpack.c.bf16 %v5945_v33, %v5944_v57 }
 0xdce   : > { %v5948_v4 = vpop.permute.xlu1 %5947 }
 0xdcf   : > { %v5950_v7 = vunpack.i.h.bf16 %v5948_v4  ;;  %v5949_v8 = vunpack.i.l.bf16 %v5948_v4 }
 0xdd1   : > { %v5793_v15 = vpack.c.bf16 %v5950_v7, %v5949_v8  ;;  %v497_v7 = vld [vmem:[%s6902_s3 + $0x108] sm:$0xff] }
 0xdd2   : > { %v6019_v46 = vpop.eup %6018  ;;  %v2950_v42 = vpop.permute.xlu1 %2949 }
 0xdd3   : > { %v2309_v47 = vsel %vm1726_vm7, %v6019_v46, 0.0 }
 0xdd4   : > { %2310 = vadd.xlane.f32.xlu0 %v2309_v47 }
 0xdd5   : > { %v6021_v48 = vpop.eup %6020 }
 0xdd6   : > { %v2312_v49 = vsel %vm1730_vm6, %v6021_v48, 0.0  ;;  %v2948_v45 = vpop.permute.xlu1 %2947 }
 0xdd8   : > { %2313 = vadd.xlane.f32.xlu0 %v2312_v49 }
 0xe61   : > { %v2311_v52 = vpop.xlane.xlu0 %2310 }
 0xe62   : > { %6022 = vrcp.f32 %v2311_v52 }
 0xe65   : > { %v2314_v55 = vpop.xlane.xlu0 %2313 }
 0xe66   : > { %6024 = vrcp.f32 %v2314_v55 }
 0xe6a   : > { %v5490_v54 = vpop.f32.mrb[18].mxu1 }
 0xe6b   : > { %v1830_v56 = vpop.f32.mrb[19].mxu1 }
 0xe6c   : > { %v6023_v2 = vpop.eup %6022 }
 0xe6d   : > { %v2317_v12 = vmul.f32 %v6023_v2, %v6019_v46 }
 0xe6e   : > { %v5504_v58 = vpop.f32.mrb[20].mxu1 }
 0xe6f   : > { %v2033_v59 = vpop.f32.mrb[21].mxu1 }
 0xe70   : > { %5507 = vmatprep.mubr.msk.f32.mxu1 %vm590_vm3, %v2033_v59  ;;  %v6025_v5 = vpop.eup %6024 }
 0xe71   : > { %5508 = vmatmul.mubr.msk.f32.vlgmr.msra.gmra.mrb[22].mxu1 %vm590_vm3, %v5504_v58  ;;  %v5540_v61 = vpop.f32.mrb[22].mxu0  ;;  %v2318_v13 = vmul.f32 %v6025_v5, %v6021_v48 }
 0xe72   : > { %5511 = vmatpush3.msra.mxu1 %v492_v51  ;;  %5512 = vmatprep.mubr.msk.f32.mxu1 %vm590_vm3, %v1830_v56  ;;  %v2572_v62 = vpop.f32.mrb[23].mxu0  ;;  %v2582_v0 = vmul.f32 0.35355338, %v5540_v61 }
 0xe73   : > { %5783 = vmatprep.subr.msk.bf16.mxu1 %vm6519_vm10, %v5781_v60  ;;  %v2581_v63 = vmul.f32 0.35355338, %v2572_v62 }
 0xe74   : > { %v2586_v11 = vsel %vm1730_vm6, %v2582_v0, -inf }
 0xe75   : > { %v2583_v1 = vsel %vm1726_vm7, %v2581_v63, -inf }
 0xe76   : > { %2584 = vmax.xlane.f32.xlu0 %v2583_v1  ;;  %v498_v1 = vld [vmem:[%s6902_s3 + $0x110] sm:$0xff] }
 0xe79   : > { %5513 = vmatmul.mubr.msk.f32.vlgmr.msra.gmra.mrb[22].mxu1 %vm590_vm3, %v5490_v54 }
 0xe7a   : > { %5786 = vmatpush3.bf16.msk.msra.mxu1 %vm6519_vm10, %v5781_v60  ;;  %2587 = vmax.xlane.f32.xlu0 %v2586_v11 }
 0xe7b   : > { %5526 = vmatprep.mubr.msk.f32.mxu1 %vm1726_vm7, %v2317_v12  ;;  %5529 = vmatprep.subr.mxu1 %v494_v6 }
 0xe7d   : > { %5527 = vmatmul.mubr.msk.f32.vlgmr.msra.gmra.mrb[24].mxu1 %vm1726_vm7, %v2318_v13 }
 0xe7e   : > { %5530 = vmatpush3.msra.mxu1 %v494_v6 }
 0xe7f   : > { %5795 = vmatprep.subr.msk.bf16.mxu1 %vm6519_vm10, %v5793_v15 }
 0xf03   : > { %v2585_v16 = vpop.xlane.xlu0 %2584 }
 0xf04   : > { %v2589_v17 = vsub.f32 %v2581_v63, %v2585_v16 }
 0xf06   : > { %v2591_v14 = vmul.f32 1.442695, %v2589_v17 }
 0xf07   : > { %v2588_v41 = vpop.xlane.xlu0 %2587 }
 0xf08   : > { %6026 = vpow2.f32 %v2591_v14  ;;  %v2590_v19 = vsub.f32 %v2582_v0, %v2588_v41 }
 0xf0a   : > { %v2593_v20 = vmul.f32 1.442695, %v2590_v19 }
 0xf0c   : > { %6028 = vpow2.f32 %v2593_v20 }
 0xf12   : > { %v6027_v21 = vpop.eup %6026 }
 0xf13   : > { %v2595_v22 = vsel %vm1726_vm7, %v6027_v21, 0.0 }
 0xf14   : > { %2596 = vadd.xlane.f32.xlu0 %v2595_v22 }
 0xf16   : > { %v6029_v24 = vpop.eup %6028 }
 0xf17   : > { %v2598_v25 = vsel %vm1730_vm6, %v6029_v24, 0.0 }
 0xf18   : > { %2599 = vadd.xlane.f32.xlu0 %v2598_v25 }
 0xf2e   : > { %2783 = vrot.lane.b32.xlu0 %v6512_v10, %s6134_s11 }
 0xf50   : > { %v5528_v26 = vpop.f32.mrb[24].mxu1 }
 0xf51   : > { %v2398_v27 = vpop.f32.mrb[25].mxu1 }
 0xf52   : > { %5531 = vmatprep.mubr.msk.f32.mxu1 %vm590_vm3, %v2398_v27 }
 0xf53   : > { %5532 = vmatmul.mubr.msk.f32.vlgmr.msra.gmra.mrb[22].mxu1 %vm590_vm3, %v5528_v26 }
 0xf54   : > { %5798 = vmatpush3.bf16.msk.msra.mxu1 %vm6519_vm10, %v5793_v15 }
 0xf55   : > { %5548 = vmatprep.subr.mxu1 %v495_v36 }
 0xfa1   : > { %v2597_v28 = vpop.xlane.xlu0 %2596 }
 0xfa2   : > { %6030 = vrcp.f32 %v2597_v28 }
 0xfa5   : > { %v2600_v29 = vpop.xlane.xlu0 %2599 }
 0xfa6   : > { %6032 = vrcp.f32 %v2600_v29 }
 0xfa9   : > { %v2784_v30 = vpop.permute.xlu0 %2783 }
 0xfaa   : > { %5554 = vmatpush3.xpose.msk.msra.mxu0 %vm590_vm3, %v2784_v30 }
 0xfab   : > { %5558 = vmatprep.subr.mxu0 %v6132_v9 }
 0xfac   : > { %v6031_v31 = vpop.eup %6030 }
 0xfad   : > { %5556 = vmatmul.mubr.msk.f32.vlgmr.msra.gmra.mrb[24].mxu0 %vm590_vm3, %v6512_v10  ;;  %v2603_v32 = vmul.f32 %v6031_v31, %v6027_v21 }
 0xfae   : > { %5560 = vmatprep.mubr.msk.f32.mxu0 %vm6131_vm0, %v6132_v9 }
 0xfaf   : > { %5545 = vmatprep.mubr.msk.f32.mxu1 %vm1726_vm7, %v2603_v32 }
 0xfb0   : > { %v6033_v34 = vpop.eup %6032 }
 0xfb1   : > { %v2604_v35 = vmul.f32 %v6033_v34, %v6029_v24 }
 0xfb3   : > { %5546 = vmatmul.mubr.msk.f32.vlgmr.msra.gmra.mrb[26].mxu1 %vm1726_vm7, %v2604_v35 }
 0xfb4   : > { %5549 = vmatpush3.msra.mxu1 %v495_v36 }
 0xfb5   : > { %5563 = vmatprep.subr.mxu1 %v6132_v9 }
0x1080   : > { %v2855_v37 = vpop.f32.mrb[24].mxu0 }
0x1081   : > { %v2859_v38 = vmul.f32 0.35355338, %v2855_v37  ;;  %v5557_v39 = vpop.f32.mrb[25].mxu0 }
0x1083   : > { %v2860_v40 = vsel %vm590_vm3, %v2859_v38, -inf }
0x1084   : > { %2861 = vmax.xlane.f32.xlu1 %v2860_v40 }
0x1086   : > { %v5547_v43 = vpop.f32.mrb[26].mxu1 }
0x1087   : > { %v2684_v44 = vpop.f32.mrb[27].mxu1 }
0x1088   : > { %5550 = vmatprep.mubr.msk.f32.mxu1 %vm590_vm3, %v2684_v44 }
0x1089   : > { %5551 = vmatmul.mubr.msk.f32.vlgmr.msra.gmra.mrb[22].mxu1 %vm590_vm3, %v5547_v43 }
0x108a   : > { %5564 = vmatpush3.xpose.msk.msra.mxu1 %vm590_vm3, %v2950_v42  ;;  %5565 = vmatprep.mubr.msk.f32.mxu1 %vm6131_vm0, %v6132_v9 }
0x108b   : > { %5573 = vmatprep.subr.mxu1 %v6132_v9 }
0x108d   : > { %5566 = vmatmul.mubr.msk.f32.vlgmr.msra.gmra.mrb[28].mxu1 %vm590_vm3, %v2948_v45 }
0x108e   : > { %5575 = vmatprep.mubr.msk.f32.mxu1 %vm6131_vm0, %v6132_v9  ;;  %5574 = vmatpush3.msra.mxu1 %v498_v1  ;;  %v509_v1 = vld [vmem:[%s6902_s3 + $0x168] sm:$0xff] }
0x108f   : > { %5583 = vmatprep.subr.mxu1 %v6132_v9 }
0x1111   : > { %v2862_v46 = vpop.xlane.xlu1 %2861 }
0x1112   : > { %v2863_v47 = vsub.f32 %v2859_v38, %v2862_v46  ;;  %v499_v38 = vld [vmem:[%s6902_s3 + $0x118] sm:$0xff] }
0x1114   : > { %v2864_v48 = vmul.f32 1.442695, %v2863_v47 }
0x1116   : > { %6034 = vpow2.f32 %v2864_v48 }
0x1120   : > { %v6035_v49 = vpop.eup %6034 }
0x1121   : > { %v2866_v50 = vsel %vm590_vm3, %v6035_v49, 0.0 }
0x1122   : > { %2867 = vadd.xlane.f32.xlu1 %v2866_v50 }
0x115c   : > { %v6603_v51 = vpop.f32.mrb[22].mxu1 }
0x115d   : > { %v6605_v52 = vpop.f32.mrb[23].mxu1 }
0x1160   : > { %v3021_v53 = vpop.f32.mrb[28].mxu1 }
0x1161   : > { %v3025_v54 = vmul.f32 0.35355338, %v3021_v53  ;;  %v5567_v55 = vpop.f32.mrb[29].mxu1 }
0x1163   : > { %v3026_v56 = vsel %vm590_vm3, %v3025_v54, -inf }
0x1164   : > { %3027 = vmax.xlane.f32.xlu0 %v3026_v56 }
0x117a   : > { %2871 = vrot.lane.b32.xlu0 %v6512_v10, %s6141_s30 }
0x117e   : > { %3259 = vrot.lane.b32.xlu0 %v6512_v10, %s6136_s14 }
0x11af   : > { %v2868_v33 = vpop.xlane.xlu1 %2867 }
0x11b0   : > { %6036 = vrcp.f32 %v2868_v33 }
0x11ba   : > { %v6037_v58 = vpop.eup %6036 }
0x11bb   : > { %v2870_v61 = vmul.f32 %v6037_v58, %v6035_v49 }
0x11f1   : > { %v3028_v57 = vpop.xlane.xlu0 %3027 }
0x11f2   : > { %v3029_v59 = vsub.f32 %v3025_v54, %v3028_v57  ;;  %v500_v54 = vld [vmem:[%s6902_s3 + $0x120] sm:$0xff] }
0x11f4   : > { %v3030_v60 = vmul.f32 1.442695, %v3029_v59  ;;  %v507_v59 = vld [vmem:[%s6902_s3 + $0x158] sm:$0xff] }
0x11f5   : > { %v2872_v62 = vpop.permute.xlu0 %2871 }
0x11f6   : > { %6038 = vpow2.f32 %v3030_v60  ;;  %5559 = vmatpush3.msra.mxu0 %v2872_v62  ;;  %v508_v60 = vld [vmem:[%s6902_s3 + $0x160] sm:$0xff]  ;;  %v502_v62 = vld [vmem:[%s6902_s3 + $0x130] sm:$0xff] }
0x11f7   : > { %5561 = vmatmul.mubr.msk.f32.vlgmr.msra.gmra.mrb[26].mxu0 %vm590_vm3, %v2870_v61  ;;  %5568 = vmatprep.subr.mxu0 %v6132_v9  ;;  %v5805_v61 = vpack.c.bf16 %v508_v60, %v507_v59 }
0x11f8   : > { %5570 = vmatprep.mubr.msk.f32.mxu0 %vm6131_vm0, %v6132_v9 }
0x11f9   : > { %v3260_v16 = vpop.permute.xlu0 %3259 }
0x1200   : > { %v6039_v63 = vpop.eup %6038 }
0x1201   : > { %v3032_v0 = vsel %vm590_vm3, %v6039_v63, 0.0 }
0x1202   : > { %3033 = vadd.xlane.f32.xlu1 %v3032_v0 }
0x1213   : > { %3037 = vrot.lane.b32.xlu1 %v6512_v10, %s6140_s5 }
0x1217   : > { %3261 = vrot.lane.b32.xlu1 %v6512_v10, %s6137_s27 }
0x128f   : > { %v3034_v2 = vpop.xlane.xlu1 %3033 }
0x1290   : > { %6040 = vrcp.f32 %v3034_v2  ;;  %v510_v2 = vld [vmem:[%s6902_s3 + $0x170] sm:$0xff] }
0x1293   : > { %v3038_v4 = vpop.permute.xlu1 %3037 }
0x1294   : > { %5569 = vmatpush3.msra.mxu0 %v3038_v4  ;;  %v5148_v4 = vld [vmem:[%s6902_s3 + $0xc0] ss:$0 sm:$0xff] }
0x1295   : > { %5578 = vmatprep.subr.mxu0 %v6132_v9 }
0x1297   : > { %v3262_v13 = vpop.permute.xlu1 %3261 }
0x129a   : > { %v6041_v5 = vpop.eup %6040 }
0x129b   : > { %v3036_v6 = vmul.f32 %v6041_v5, %v6039_v63  ;;  %v503_v63 = vld [vmem:[%s6902_s3 + $0x138] sm:$0xff]  ;;  %v5809_v5 = vpack.c.bf16 %v510_v2, %v509_v1 }
0x129c   : > { %v5800_v0 = vpack.c.bf16 %v503_v63, %v502_v62 }
0x129d   : > { %5571 = vmatmul.mubr.msk.f32.vlgmr.msra.gmra.mrb[28].mxu0 %vm590_vm3, %v3036_v6  ;;  %v2780_v6 = vadd.f32 %v5148_v4, %v6605_v52  ;;  %v504_v52 = vld [vmem:[%s6902_s3 + $0x140] sm:$0xff] }
0x129e   : > { %5579 = vmatpush3.msra.mxu0 %v497_v7  ;;  %5580 = vmatprep.mubr.msk.f32.mxu0 %vm6131_vm0, %v6132_v9 }
0x129f   : > { %5588 = vmatprep.subr.mxu0 %v6132_v9 }
0x12ca   : > { %v2943_v8 = vpop.f32.mrb[26].mxu0 }
0x12cb   : > { %v5562_v11 = vpop.f32.mrb[27].mxu0  ;;  %5581 = vmatmul.mubr.msk.f32.vlgmr.msra.gmra.mrb[30].mxu0 %vm590_vm3, %v2943_v8 }
0x12cc   : > { %5590 = vmatprep.mubr.msk.f32.mxu0 %vm6131_vm0, %v6132_v9  ;;  %v2781_v11 = vadd.f32 %v6603_v51, %v5148_v4  ;;  %v5165_v51 = vld [vmem:[%s6902_s3 + $0x128] ss:$0 sm:$0xff] }
0x1370   : > { %v3109_v12 = vpop.f32.mrb[28].mxu0 }
0x1371   : > { %v5572_v15 = vpop.f32.mrb[29].mxu0  ;;  %5576 = vmatmul.mubr.msk.f32.vlgmr.msra.gmra.mrb[30].mxu1 %vm590_vm3, %v3109_v12  ;;  %v505_v12 = vld [vmem:[%s6902_s3 + $0x148] sm:$0xff] }
0x1372   : > { %5584 = vmatpush3.xpose.msk.msra.mxu1 %vm590_vm3, %v3262_v13  ;;  %5585 = vmatprep.mubr.msk.f32.mxu1 %vm6131_vm0, %v6132_v9  ;;  %v5803_v13 = vpack.c.bf16 %v505_v12, %v504_v52  ;;  %v513_v12 = vld [vmem:[%s6902_s3 + $0x188] sm:$0xff] }
0x1373   : > { %5593 = vmatprep.subr.mxu1 %v6132_v9 }
0x1375   : > { %5586 = vmatmul.mubr.msk.f32.vlgmr.msra.gmra.mrb[32].mxu1 %vm590_vm3, %v3260_v16 }
0x1376   : > { %5595 = vmatprep.mubr.msk.f32.mxu1 %vm6131_vm0, %v6132_v9  ;;  %5594 = vmatpush3.msra.mxu1 %v499_v38 }
0x1377   : > { %5603 = vmatprep.subr.mxu1 %v6132_v9 }
0x139e   : > { %v3255_v17 = vpop.f32.mrb[30].mxu0 }
0x139f   : > { %v5582_v14 = vpop.f32.mrb[31].mxu0 }
0x1444   : > { %v3182_v41 = vpop.f32.mrb[30].mxu1 }
0x1445   : > { %v3256_v19 = vadd.f32 %v3255_v17, %v3182_v41  ;;  %v5577_v20 = vpop.f32.mrb[31].mxu1  ;;  %v5168_v41 = vld [vmem:[%s6902_s3 + $0x178] ss:$0 sm:$0xff] }
0x1448   : > { %v3333_v21 = vpop.f32.mrb[32].mxu1 }
0x1449   : > { %v3337_v22 = vmul.f32 0.35355338, %v3333_v21  ;;  %v5587_v24 = vpop.f32.mrb[33].mxu1 }
0x144b   : > { %v3338_v25 = vsel %vm590_vm3, %v3337_v22, -inf }
0x144c   : > { %3339 = vmax.xlane.f32.xlu1 %v3338_v25 }
0x145d   : > { %3501 = vrot.lane.b32.xlu1 %v6512_v10, %s6139_s6 }
0x1461   : > { %3499 = vrot.lane.b32.xlu1 %v6512_v10, %s6138_s28 }
0x14d9   : > { %v3340_v26 = vpop.xlane.xlu1 %3339 }
0x14da   : > { %v3341_v27 = vsub.f32 %v3337_v22, %v3340_v26  ;;  %v5166_v26 = vld [vmem:[%s6902_s3 + $0x150] ss:$0 sm:$0xff] }
0x14dc   : > { %v3342_v28 = vmul.f32 1.442695, %v3341_v27 }
0x14dd   : > { %v3502_v35 = vpop.permute.xlu1 %3501 }
0x14de   : > { %6042 = vpow2.f32 %v3342_v28 }
0x14e1   : > { %v3500_v37 = vpop.permute.xlu1 %3499 }
0x14e8   : > { %v6043_v29 = vpop.eup %6042 }
0x14e9   : > { %v3344_v30 = vsel %vm590_vm3, %v6043_v29, 0.0 }
0x14ea   : > { %3345 = vadd.xlane.f32.xlu0 %v3344_v30 }
0x1500   : > { %3349 = vrot.lane.b32.xlu0 %v6512_v10, %s6142_s7 }
0x1577   : > { %v3346_v31 = vpop.xlane.xlu0 %3345 }
0x1578   : > { %6044 = vrcp.f32 %v3346_v31 }
0x157b   : > { %v3350_v32 = vpop.permute.xlu0 %3349 }
0x157c   : > { %5589 = vmatpush3.msra.mxu0 %v3350_v32 }
0x157d   : > { %5598 = vmatprep.subr.mxu0 %v6132_v9 }
0x1582   : > { %v6045_v34 = vpop.eup %6044 }
0x1583   : > { %v3348_v36 = vmul.f32 %v6045_v34, %v6043_v29 }
0x1585   : > { %5591 = vmatmul.mubr.msk.f32.vlgmr.msra.gmra.mrb[32].mxu0 %vm590_vm3, %v3348_v36 }
0x1586   : > { %5599 = vmatpush3.xpose.msk.msra.mxu0 %vm590_vm3, %v3502_v35  ;;  %5600 = vmatprep.mubr.msk.f32.mxu0 %vm6131_vm0, %v6132_v9 }
0x1587   : > { %5608 = vmatprep.subr.mxu0 %v6132_v9 }
0x1589   : > { %5601 = vmatmul.mubr.msk.f32.vlgmr.msra.gmra.mrb[34].mxu0 %vm590_vm3, %v3500_v37 }
0x158a   : > { %5610 = vmatprep.mubr.msk.f32.mxu0 %vm6131_vm0, %v6132_v9  ;;  %5609 = vmatpush3.msra.mxu0 %v500_v54 }
0x158b   : > { %5806 = vmatprep.subr.bf16.mxu0 %v5805_v61 }
0x1658   : > { %v3421_v39 = vpop.f32.mrb[32].mxu0 }
0x1659   : > { %v5592_v40 = vpop.f32.mrb[33].mxu0  ;;  %5596 = vmatmul.mubr.msk.f32.vlgmr.msra.gmra.mrb[34].mxu1 %vm590_vm3, %v3421_v39 }
0x165a   : > { %5605 = vmatprep.mubr.msk.f32.mxu1 %vm6131_vm0, %v6132_v9 }
0x165c   : > { %v3573_v42 = vpop.f32.mrb[34].mxu0 }
0x165d   : > { %v3577_v43 = vmul.f32 0.35355338, %v3573_v42  ;;  %v5602_v44 = vpop.f32.mrb[35].mxu0 }
0x165f   : > { %v3578_v45 = vsel %vm590_vm3, %v3577_v43, -inf }
0x1660   : > { %3579 = vmax.xlane.f32.xlu0 %v3578_v45 }
0x1676   : > { %3589 = vrot.lane.b32.xlu0 %v6512_v10, %s6143_s13 }
0x16ed   : > { %v3580_v46 = vpop.xlane.xlu0 %3579 }
0x16ee   : > { %v3581_v47 = vsub.f32 %v3577_v43, %v3580_v46 }
0x16f0   : > { %v3582_v48 = vmul.f32 1.442695, %v3581_v47 }
0x16f1   : > { %v3590_v49 = vpop.permute.xlu0 %3589 }
0x16f2   : > { %6046 = vpow2.f32 %v3582_v48  ;;  %5604 = vmatpush3.msra.mxu1 %v3590_v49 }
0x16f3   : > { %5799 = vmatprep.subr.bf16.mxu1 %v6130_v3 }
0x16fc   : > { %v6047_v50 = vpop.eup %6046 }
0x16fd   : > { %v3584_v53 = vsel %vm590_vm3, %v6047_v50, 0.0 }
0x16fe   : > { %3585 = vadd.xlane.f32.xlu1 %v3584_v53 }
0x172c   : > { %v3494_v55 = vpop.f32.mrb[34].mxu1 }
0x172d   : > { %v3498_v56 = vadd.f32 %v3494_v55, %v3256_v19  ;;  %v5597_v10 = vpop.f32.mrb[35].mxu1  ;;  %v512_v55 = vld [vmem:[%s6902_s3 + $0x180] sm:$0xff] }
0x178b   : > { %v3586_v33 = vpop.xlane.xlu1 %3585 }
0x178c   : > { %6048 = vrcp.f32 %v3586_v33 }
0x1796   : > { %v6049_v57 = vpop.eup %6048 }
0x1797   : > { %v3588_v58 = vmul.f32 %v6049_v57, %v6047_v50 }
0x1799   : > { %5606 = vmatmul.mubr.msk.f32.vlgmr.msra.gmra.mrb[36].mxu1 %vm590_vm3, %v3588_v58 }
0x179a   : > { %5621 = vmatprep.mubr.msk.f32.mxu1 %vm6131_vm0, %v6132_v9  ;;  %5801 = vmatpush3.bf16.msra.mxu1 %v5800_v0 }
0x179b   : > { %5802 = vmatprep.subr.bf16.mxu1 %v6130_v3 }
0x179e   : > { %5804 = vmatpush3.bf16.msra.mxu1 %v5803_v13 }
0x179f   : > { %5813 = vmatprep.subr.bf16.mxu1 %v6130_v3 }
0x186c   : > { %v3661_v7 = vpop.f32.mrb[36].mxu1 }
0x186d   : > { %v5607_v8 = vpop.f32.mrb[37].mxu1  ;;  %5611 = vmatmul.mubr.msk.f32.vlgmr.msra.gmra.mrb[36].mxu0 %vm590_vm3, %v3661_v7 }
0x186e   : > { %5808 = vmatpush3.bf16.msra.mxu0 %v5805_v61  ;;  %5632 = vmatprep.mubr.msk.f32.mxu0 %vm237_vm2, %v2780_v6 }
0x186f   : > { %5810 = vmatprep.subr.bf16.mxu0 %v5809_v5 }
0x1872   : > { %5812 = vmatpush3.bf16.msra.mxu0 %v5809_v5 }
0x1873   : > { %5817 = vmatprep.subr.bf16.mxu0 %v6130_v3 }
0x1875   : > { %5633 = vmatmul.mubr.msk.f32.vlgmr.msra.gmra.mrb[38].mxu0 %vm237_vm2, %v2781_v11 }
0x1876   : > { %5646 = vmatprep.mubr.msk.f32.mxu0 %vm6131_vm0, %v6132_v9 }
0x1940   : > { %v3734_v15 = vpop.f32.mrb[36].mxu0 }
0x1941   : > { %v3738_v16 = vadd.f32 %v3734_v15, %v3498_v56  ;;  %v5612_v17 = vpop.f32.mrb[37].mxu0 }
0x1943   : > { %v3743_v14 = vadd.f32 %v5165_v51, %v3738_v16 }
0x1945   : > { %5622 = vmatmul.mubr.msk.f32.vlgmr.msra.gmra.mrb[38].mxu1 %vm237_vm2, %v3743_v14 }
0x1946   : > { %5639 = vmatprep.mubr.msk.f32.mxu1 %vm6131_vm0, %v6132_v9 }
0x1948   : > { %v5634_v19 = vpop.f32.mrb[38].mxu0 }
0x1949   : > { %v3903_v20 = vadd.f32 %v5634_v19, %v5168_v41  ;;  %v3897_v21 = vpop.f32.mrb[39].mxu0 }
0x194a   : > { %v3898_v22 = vadd.f32 %v5168_v41, %v3897_v21 }
0x194c   : > { %v6725_v24 = vpack.i.bf16 %v3903_v20, %v3898_v22  ;;  %v5814_v25 = vpack.c.bf16 %v3903_v20, %v3898_v22 }
0x194e   : > { %5957 = vrot.lane.b32.xlu0 %v6725_v24, %s6133_s8  ;;  %5816 = vmatpush3.bf16.xpose.msk.msra.mxu1 %vm6450_vm5, %v5814_v25 }
0x194f   : > { %5825 = vmatprep.subr.bf16.mxu1 %v6130_v3 }
0x19c0   : > { %v5958_v46 = vpop.permute.xlu0 %5957 }
0x19c1   : > { %v5960_v48 = vunpack.i.h.bf16 %v5958_v46  ;;  %v5959_v49 = vunpack.i.l.bf16 %v5958_v46 }
0x19c3   : > { %v5822_v53 = vpack.c.bf16 %v5960_v48, %v5959_v49 }
0x1a18   : > { %v3817_v27 = vpop.f32.mrb[38].mxu1 }
0x1a19   : > { %v3818_v28 = vadd.f32 %v5166_v26, %v3817_v27  ;;  %v5623_v29 = vpop.f32.mrb[39].mxu1 }
0x1a1b   : > { %4077 = vrot.lane.b32.xlu0 %v3818_v28, %s6133_s8  ;;  %5640 = vmatmul.mubr.msk.f32.vlgmr.msra.gmra.mrb[40].mxu1 %vm590_vm3, %v3818_v28 }
0x1a1c   : > { %5660 = vmatprep.mubr.msk.f32.mxu1 %vm6131_vm0, %v6132_v9 }
0x1a8d   : > { %v4078_v54 = vpop.permute.xlu0 %4077 }
0x1aee   : > { %v3981_v30 = vpop.f32.mrb[40].mxu1 }
0x1aef   : > { %v3985_v31 = vmul.f32 0.35355338, %v3981_v30  ;;  %v5641_v32 = vpop.f32.mrb[41].mxu1 }
0x1af1   : > { %v3986_v34 = vsel %vm1726_vm7, %v3985_v31, -inf }
0x1af2   : > { %3987 = vmax.xlane.f32.xlu1 %v3986_v34 }
0x1b7f   : > { %v3988_v35 = vpop.xlane.xlu1 %3987 }
0x1b80   : > { %v3989_v36 = vsub.f32 %v3985_v31, %v3988_v35 }
0x1b82   : > { %v3990_v37 = vmul.f32 1.442695, %v3989_v36 }
0x1b84   : > { %6050 = vpow2.f32 %v3990_v37 }
0x1b8e   : > { %v6051_v38 = vpop.eup %6050 }
0x1b8f   : > { %v3992_v39 = vsel %vm1726_vm7, %v6051_v38, 0.0 }
0x1b90   : > { %3993 = vadd.xlane.f32.xlu1 %v3992_v39 }
0x1ba1   : > { %5952 = vrot.lane.b32.xlu1 %v6725_v24, %s6134_s11  ;;  %s212_s11 = sand.u32 1, %s6120_s16  }
0x1ba2   : > { %s4982_s10 = scalar_lea.sflag [#allocation3], %s212_s11 }
0x1c1d   : > { %v3994_v40 = vpop.xlane.xlu1 %3993 }
0x1c1e   : > { %6052 = vrcp.f32 %v3994_v40 }
0x1c21   : > { %v5953_v42 = vpop.permute.xlu1 %5952 }
0x1c22   : > { %v5955_v43 = vunpack.i.h.bf16 %v5953_v42  ;;  %v5954_v44 = vunpack.i.l.bf16 %v5953_v42 }
0x1c24   : > { %v5818_v45 = vpack.c.bf16 %v5955_v43, %v5954_v44 }
0x1c26   : > { %5820 = vmatpush3.bf16.msk.msra.mxu0 %vm6519_vm10, %v5818_v45 }
0x1c27   : > { %5821 = vmatprep.subr.bf16.mxu0 %v6130_v3 }
0x1c28   : > { %v6053_v47 = vpop.eup %6052 }
0x1c29   : > { %v3996_v50 = vmul.f32 %v6053_v47, %v6051_v38 }
0x1c2b   : > { %5647 = vmatmul.mubr.msk.f32.vlgmr.msra.gmra.mrb[40].mxu0 %vm1726_vm7, %v3996_v50 }
0x1c2c   : > { %5653 = vmatprep.mubr.msk.f32.mxu0 %vm6131_vm0, %v6132_v9 }
0x1c2f   : > { %5824 = vmatpush3.bf16.xpose.msk.msra.mxu0 %vm6450_vm5, %v5822_v53 }
0x1c30   : > { %5668 = vmatprep.subr.mxu0 %v6132_v9 }
0x1c36   : > { %5654 = vmatmul.mubr.msk.f32.vlgmr.msra.gmra.mrb[42].mxu0 %vm590_vm3, %v4078_v54 }
0x1c37   : > { %5670 = vmatprep.mubr.msk.f32.mxu0 %vm6131_vm0, %v6132_v9  ;;  %5669 = vmatpush3.msra.mxu0 %v512_v55 }
0x1c38   : > { %5833 = vmatprep.subr.bf16.mxu0 %v6130_v3 }
0x1cfe   : > { %v4073_v56 = vpop.f32.mrb[40].mxu0 }
0x1cff   : > { %v5648_v10 = vpop.f32.mrb[41].mxu0  ;;  %5671 = vmatmul.mubr.msk.f32.vlgmr.msra.gmra.mrb[44].mxu0 %vm590_vm3, %v4073_v56 }
0x1d00   : > { %5684 = vmatprep.mubr.msk.f32.mxu0 %vm6131_vm0, %v6132_v9  ;;  %v514_v10 = vld [vmem:[%s6902_s3 + $0x190] sm:$0xff] }
0x1d09   : > { %v4155_v33 = vpop.f32.mrb[42].mxu0 }
0x1d0a   : > { %v4159_v57 = vmul.f32 0.35355338, %v4155_v33  ;;  %v5655_v58 = vpop.f32.mrb[43].mxu0 }
0x1d0c   : > { %v4160_v59 = vsel %vm1726_vm7, %v4159_v57, -inf }
0x1d0d   : > { %4161 = vmax.xlane.f32.xlu0 %v4160_v59 }
0x1d23   : > { %5962 = vrot.lane.b32.xlu0 %v6725_v24, %s6135_s12  ;;  %s5082_s12 = sshll.u32 %s212_s11, 3 }
0x1d27   : > { %4397 = vrot.lane.b32.xlu0 %v3818_v28, %s6136_s14 }
0x1d2b   : > { %4645 = vrot.lane.b32.xlu0 %v3818_v28, %s6138_s28 }
0x1d9a   : > { %v4162_v60 = vpop.xlane.xlu0 %4161 }
0x1d9b   : > { %v4163_v61 = vsub.f32 %v4159_v57, %v4162_v60 }
0x1d9d   : > { %v4164_v62 = vmul.f32 1.442695, %v4163_v61 }
0x1d9e   : > { %v5963_v63 = vpop.permute.xlu0 %5962 }
0x1d9f   : > { %6054 = vpow2.f32 %v4164_v62  ;;  %v5965_v0 = vunpack.i.h.bf16 %v5963_v63  ;;  %v5964_v1 = vunpack.i.l.bf16 %v5963_v63 }
0x1da1   : > { %v5826_v2 = vpack.c.bf16 %v5965_v0, %v5964_v1  ;;  %v515_v0 = vld [vmem:[%s6902_s3 + $0x198] sm:$0xff]  ;;  %v4899_v1 = vld [vmem:[%s6902_s3 + $0x1b0] sm:$0xff] }
0x1da2   : > { %v4398_v21 = vpop.permute.xlu0 %4397 }
0x1da3   : > { %5828 = vmatpush3.bf16.msk.msra.mxu1 %vm6519_vm10, %v5826_v2  ;;  %v5846_v2 = vpack.c.bf16 %v4899_v1, %v4898_v23 }
0x1da4   : > { %5663 = vmatprep.subr.mxu1 %v6132_v9 }
0x1da6   : > { %v4646_v25 = vpop.permute.xlu0 %4645 }
0x1da9   : > { %v6055_v4 = vpop.eup %6054 }
0x1daa   : > { %v4166_v5 = vsel %vm1726_vm7, %v6055_v4, 0.0 }
0x1dab   : > { %4167 = vadd.xlane.f32.xlu1 %v4166_v5 }
0x1dbc   : > { %5967 = vrot.lane.b32.xlu1 %v6725_v24, %s6136_s14 }
0x1dc0   : > { %5972 = vrot.lane.b32.xlu1 %v6725_v24, %s6138_s28  ;;  %s5199_s28 = sshll.u32 %s6192_s19, 7  ;;  %s6145_s19 = smov [#allocation2]  }
0x1dc1   : > { %s6856_s9 = scalar_lea.hbm %s6903_s4, %s5199_s28  ;;  %s6070_s13 = sshll.u32 %s6145_s19, 4  ;;  %s6071_s13 = int_to_ptr.vmem [resolvable:$false] %s6070_s13 }
0x1dc2   : > { %s6072_s22 = scalar_lea.vmem %s6071_s13, 256 }
0x1dd2   : > { %v4393_v6 = vpop.f32.mrb[44].mxu0 }
0x1dd3   : > { %v5672_v7 = vpop.f32.mrb[45].mxu0 }
0x1e38   : > { %v4168_v8 = vpop.xlane.xlu1 %4167 }
0x1e39   : > { %6056 = vrcp.f32 %v4168_v8  ;;  %v4900_v8 = vld [vmem:[%s6902_s3 + $0x1b8] sm:$0xff] }
0x1e3c   : > { %v5968_v13 = vpop.permute.xlu1 %5967 }
0x1e3d   : > { %v5970_v51 = vunpack.i.h.bf16 %v5968_v13  ;;  %v5969_v15 = vunpack.i.l.bf16 %v5968_v13 }
0x1e3f   : > { %v5830_v16 = vpack.c.bf16 %v5970_v51, %v5969_v15 }
0x1e40   : > { %v5973_v14 = vpop.permute.xlu1 %5972 }
0x1e41   : > { %v5975_v19 = vunpack.i.h.bf16 %v5973_v14  ;;  %v5974_v20 = vunpack.i.l.bf16 %v5973_v14 }
0x1e43   : > { %v6057_v11 = vpop.eup %6056  ;;  %v5838_v22 = vpack.c.bf16 %v5975_v19, %v5974_v20 }
0x1e44   : > { %v4170_v52 = vmul.f32 %v6057_v11, %v6055_v4  ;;  %v4901_v11 = vld [vmem:[%s6902_s3 + $0x1c0] sm:$0xff] }
0x1e46   : > { %5661 = vmatmul.mubr.msk.f32.vlgmr.msra.gmra.mrb[42].mxu1 %vm1726_vm7, %v4170_v52  ;;  %v5849_v52 = vpack.c.bf16 %v4901_v11, %v4900_v8 }
0x1e47   : > { %5664 = vmatpush3.msra.mxu1 %v513_v12  ;;  %5665 = vmatprep.mubr.msk.f32.mxu1 %vm6131_vm0, %v6132_v9 }
0x1e48   : > { %5829 = vmatprep.subr.bf16.mxu1 %v6130_v3 }
0x1f19   : > { %v4247_v17 = vpop.f32.mrb[42].mxu1 }
0x1f1a   : > { %v5662_v41 = vpop.f32.mrb[43].mxu1  ;;  %5666 = vmatmul.mubr.msk.f32.vlgmr.msra.gmra.mrb[44].mxu1 %vm590_vm3, %v4247_v17 }
0x1f1b   : > { %5832 = vmatpush3.bf16.xpose.msk.msra.mxu1 %vm6450_vm5, %v5830_v16  ;;  %5677 = vmatprep.mubr.msk.f32.mxu1 %vm6131_vm0, %v6132_v9  ;;  %v5196_v16 = vld [vmem:[%s6902_s3 + $0x1c8] ss:$0 sm:$0xff] }
0x1f1c   : > { %5837 = vmatprep.subr.bf16.mxu1 %v6130_v3 }
0x1f22   : > { %5678 = vmatmul.mubr.msk.f32.vlgmr.msra.gmra.mrb[46].mxu1 %vm590_vm3, %v4398_v21 }
0x1f23   : > { %5840 = vmatpush3.bf16.xpose.msk.msra.mxu1 %vm6450_vm5, %v5838_v22  ;;  %5696 = vmatprep.mubr.msk.f32.mxu1 %vm6131_vm0, %v6132_v9 }
0x1f24   : > { %5845 = vmatprep.subr.bf16.mxu1 %v6130_v3 }
0x1f2a   : > { %5697 = vmatmul.mubr.msk.f32.vlgmr.msra.gmra.mrb[48].mxu1 %vm590_vm3, %v4646_v25 }
0x1f2b   : > { %5719 = vmatprep.mubr.msk.f32.mxu1 %vm6131_vm0, %v6132_v9  ;;  %5847 = vmatpush3.bf16.msra.mxu1 %v5846_v2 }
0x1f2c   : > { %5848 = vmatprep.subr.bf16.mxu1 %v6130_v3 }
0x1f2f   : > { %5850 = vmatpush3.bf16.msra.mxu1 %v5849_v52 }
0x1fed   : > { %v4320_v26 = vpop.f32.mrb[44].mxu1 }
0x1fee   : > { %v6797_v27 = vadd.f32 %v4393_v6, %v4320_v26  ;;  %v5667_v28 = vpop.f32.mrb[45].mxu1 }
0x1ff5   : > { %v4475_v29 = vpop.f32.mrb[46].mxu1 }
0x1ff6   : > { %v4479_v30 = vmul.f32 0.35355338, %v4475_v29  ;;  %v5679_v31 = vpop.f32.mrb[47].mxu1 }
0x1ff8   : > { %v4480_v18 = vsel %vm1726_vm7, %v4479_v30, -inf }
0x1ff9   : > { %4481 = vmax.xlane.f32.xlu1 %v4480_v18 }
0x1ffd   : > { %v4723_v32 = vpop.f32.mrb[48].mxu1 }
0x1ffe   : > { %v4727_v34 = vmul.f32 0.35355338, %v4723_v32  ;;  %v5698_v35 = vpop.f32.mrb[49].mxu1 }
0x2000   : > { %v4728_v36 = vsel %vm1726_vm7, %v4727_v34, -inf }
0x2001   : > { %4729 = vmax.xlane.f32.xlu1 %v4728_v36 }
0x2086   : > { %v4482_v37 = vpop.xlane.xlu1 %4481 }
0x2087   : > { %v4483_v38 = vsub.f32 %v4479_v30, %v4482_v37 }
0x2089   : > { %v4484_v39 = vmul.f32 1.442695, %v4483_v38 }
0x208b   : > { %6058 = vpow2.f32 %v4484_v39 }
0x208e   : > { %v4730_v40 = vpop.xlane.xlu1 %4729 }
0x208f   : > { %v4731_v42 = vsub.f32 %v4727_v34, %v4730_v40 }
0x2091   : > { %v4732_v43 = vmul.f32 1.442695, %v4731_v42 }
0x2093   : > { %6060 = vpow2.f32 %v4732_v43 }
0x2095   : > { %v6059_v44 = vpop.eup %6058 }
0x2096   : > { %v4486_v45 = vsel %vm1726_vm7, %v6059_v44, 0.0 }
0x2097   : > { %4487 = vadd.xlane.f32.xlu0 %v4486_v45 }
0x209d   : > { %v6061_v46 = vpop.eup %6060 }
0x209e   : > { %v4734_v47 = vsel %vm1726_vm7, %v6061_v46, 0.0 }
0x209f   : > { %4735 = vadd.xlane.f32.xlu1 %v4734_v47 }
0x20ad   : > { %5977 = vrot.lane.b32.xlu0 %v6725_v24, %s6137_s27  ;;  %s214_s27 = scalar_lea.vmem [#allocation2], %s5082_s12 }
0x20b0   : > { %5982 = vrot.lane.b32.xlu1 %v6725_v24, %s6139_s6  ;;  %s4995_s6 = sshll.u32 %s214_s27, 4  ;;  %s6858_s6 = int_to_ptr.vmem [resolvable:$true] %s4995_s6 }
0x20b1   : > { %s6066_s20 = scalar_lea.vmem %s6858_s6, 128  ;;  %p6073_p0 = scmp.lt.s32.totalorder %s6858_s6, %s6071_s13 }
0x20b2   : > { %p6067_p11 = scmp.ne.s32.totalorder %s6858_s6, %s6066_s20  ;;  %p6074_p1 = scmp.lt.s32.totalorder %s6072_s22, %s6066_s20 }
0x20b4   : > { %p6068_p12 = pnand %p6067_p11, %p6209_p5  ;;  %p6075_p2 = por %p6074_p1, %p6073_p0 }
0x20b6   : > { %p6069_p13 = pneg %p6068_p12 }
0x20b8   : > { %p6076_p3 = pnand %p6075_p2, %p6069_p13 }
0x2124   : > { %v4488_v48 = vpop.xlane.xlu0 %4487 }
0x2125   : > { %6062 = vrcp.f32 %v4488_v48 }
0x2128   : > { %v5978_v49 = vpop.permute.xlu0 %5977 }
0x2129   : > { %v5980_v50 = vunpack.i.h.bf16 %v5978_v49  ;;  %v5979_v53 = vunpack.i.l.bf16 %v5978_v49 }
0x212b   : > { %v5834_v54 = vpack.c.bf16 %v5980_v50, %v5979_v53 }
0x212c   : > { %v4736_v24 = vpop.xlane.xlu1 %4735 }
0x212d   : > { %5836 = vmatpush3.bf16.msk.msra.mxu0 %vm6519_vm10, %v5834_v54  ;;  %6064 = vrcp.f32 %v4736_v24 }
0x212e   : > { %5687 = vmatprep.subr.mxu0 %v6132_v9 }
0x212f   : > { %v6063_v55 = vpop.eup %6062 }
0x2130   : > { %v4490_v56 = vmul.f32 %v6063_v55, %v6059_v44  ;;  %v5983_v33 = vpop.permute.xlu1 %5982 }
0x2131   : > { %v5985_v57 = vunpack.i.h.bf16 %v5983_v33  ;;  %v5984_v58 = vunpack.i.l.bf16 %v5983_v33 }
0x2132   : > { %5685 = vmatmul.mubr.msk.f32.vlgmr.msra.gmra.mrb[46].mxu0 %vm1726_vm7, %v4490_v56 }
0x2133   : > { %5688 = vmatpush3.msra.mxu0 %v514_v10  ;;  %5689 = vmatprep.mubr.msk.f32.mxu0 %vm6131_vm0, %v6132_v9  ;;  %v5842_v60 = vpack.c.bf16 %v5985_v57, %v5984_v58 }
0x2134   : > { %5841 = vmatprep.subr.bf16.mxu0 %v6130_v3  ;;  %v5195_v3 = vld [vmem:[%s6902_s3 + $0x1a0] ss:$0 sm:$0xff] }
0x2137   : > { %v6065_v59 = vpop.eup %6064 }
0x2138   : > { %v4738_v63 = vmul.f32 %v6065_v59, %v6061_v46 }
0x2205   : > { %v4567_v61 = vpop.f32.mrb[46].mxu0 }
0x2206   : > { %v5686_v62 = vpop.f32.mrb[47].mxu0  ;;  %5690 = vmatmul.mubr.msk.f32.vlgmr.msra.gmra.mrb[48].mxu0 %vm590_vm3, %v4567_v61 }
0x2207   : > { %5844 = vmatpush3.bf16.msk.msra.mxu0 %vm6519_vm10, %v5842_v60  ;;  %5703 = vmatprep.mubr.msk.f32.mxu0 %vm6131_vm0, %v6132_v9 }
0x2208   : > { %5706 = vmatprep.subr.mxu0 %v6132_v9 }
0x220a   : > { %5704 = vmatmul.mubr.msk.f32.vlgmr.msra.gmra.mrb[50].mxu0 %vm1726_vm7, %v4738_v63 }
0x220b   : > { %5708 = vmatprep.mubr.msk.f32.mxu0 %vm6131_vm0, %v6132_v9  ;;  %5707 = vmatpush3.msra.mxu0 %v515_v0 }
0x22d9   : > { %v4640_v4 = vpop.f32.mrb[48].mxu0 }
0x22da   : > { %v4644_v9 = vadd.f32 %v4640_v4, %v6797_v27  ;;  %v5691_v5 = vpop.f32.mrb[49].mxu0 }
0x22dd   : > { %v4815_v6 = vpop.f32.mrb[50].mxu0 }
0x22de   : > { %v5705_v7 = vpop.f32.mrb[51].mxu0  ;;  %5709 = vmatmul.mubr.msk.f32.vlgmr.msra.gmra.mrb[52].mxu0 %vm590_vm3, %v4815_v6 }
0x23b1   : > { %v4888_v12 = vpop.f32.mrb[52].mxu0 }
0x23b2   : > { %v4892_v13 = vadd.f32 %v4888_v12, %v4644_v9  ;;  %v5710_v51 = vpop.f32.mrb[53].mxu0 }
0x23b4   : > { %v4897_v15 = vadd.f32 %v5195_v3, %v4892_v13 }
0x23b6   : > { %5720 = vmatmul.mubr.msk.f32.vlgmr.msra.gmra.mrb[50].mxu1 %vm237_vm2, %v4897_v15 }
0x2489   : > { %v4976_v17 = vpop.f32.mrb[50].mxu1 }
0x248a   : > { %v4977_v14 = vadd.f32 %v5196_v16, %v4976_v17  ;;  %v5721_v41 = vpop.f32.mrb[51].mxu1 }
0x248c   : > { %4980 = vst.msk [vmem:[%s214_s27] sm:$0xff] %vm590_vm3, %v4977_v14 }
0x248d   : > { %6079 = shalt.err (!%p6076_p3)
}
0x248e   : > { %s6080_s30 = scalar_lea.hbm %s6856_s9, 128  ;;  %s6084_s11 = scalar_lea.hbm %s6903_s4, 256 }
0x248f   : > { %p6081_p4 = scmp.ne.s32.totalorder %s6856_s9, %s6080_s30  ;;  %p6085_p9 = scmp.lt.u32.totalorder %s6856_s9, %s6903_s4 }
0x2490   : > { %p6086_p10 = scmp.lt.u32.totalorder %s6084_s11, %s6080_s30  ;;  %p6088_p12 = scmp.lt.u32.totalorder %s6080_s30, %s6856_s9 }
0x2491   : > { %p6082_p7 = pnand %p6081_p4, %p6209_p5 }
0x2492   : > { %p6087_p11 = por %p6086_p10, %p6085_p9 }
0x2493   : > { %p6083_p8 = pneg %p6082_p7 }
0x2494   : > { %p6089_p13 = por %p6088_p12, %p6087_p11 }
0x2496   : > { %p6090_p0 = pnand %p6089_p13, %p6083_p8 }
0x2498   : > { %6093 = shalt.err (!%p6090_p0)
}
0x2499   : > { %5857 = dma.vmem_to_hbm [thread:$0]  (%p6209_p5), %s6858_s6, 128, %s6856_s9, %s4982_s10  }
0x249a PF: > { %p5863_p1 = scmp.ge.s32.totalorder %s6128_s18, 2  ;;  %s5007_s14 = sand.u32 1, %s6116_s15  }
0x249b   : > { %s5008_s28 = scalar_lea.sflag [#allocation3], %s5007_s14 }
0x249c   : > { %p5860_p2 = pnand %p5863_p1, %p6213_p6 }
0x249e   : > { %6111 = dma.done.wait (!%p5860_p2), %s5008_s28, 128  }
0x249f   : > { %6113 = vsyncadd (!%p5860_p2), %s5008_s28, 4294967168  ;;  %p14_p3 = scmp.ge.s32.totalorder %s6196_s21, 4   ;;  %s6910_s15 = smov %s6120_s16 }
0x24a0   : > { %s6911_s16 = smov %s6124_s17  ;;  %s6912_s17 = smov %s6207_s24 }
0x24a1   : > { %s6913_s18 = smov %s6196_s21  ;;  %16 = sbr.rel (!%p14_p3) target bundleno = 3 (0x3), region = 77 }
0x24a8   :  { %5013 = vsyncpa [#allocation3], 1 }
0x24a9   :  { %5015 = vsyncpa [#allocation3 + $0x1], 1 }

</bundles_post_ra>
